<compile_context>
chip_gen: v7x
topology: tpu7x:2x2x1
jax: 0.10.0
libtpu: 0.0.40
codegen_flags: <defaults>
</compile_context>

<pallas_src>
import math

import jax
import jax.numpy as jnp
from jax.experimental import pallas as pl
from jax.experimental.pallas import tpu as pltpu

# ----------------------------- hash-grid encoder ---------------------------- #

N_LEVELS = 16
F_PER_LEVEL = 2
LOG2_HASHMAP = 19
HASHMAP_SIZE = 1 << LOG2_HASHMAP
BASE_RES = 16
PER_LEVEL_SCALE = 1.3819
ENC_DIM = N_LEVELS * F_PER_LEVEL  # 32

_PRIMES = (1, 2654435761, 805459861)


def hash_encode(x01, tables):
    """tcnn-style multiresolution hash grid encoding, feature-major output.

    x01:    (N, 3) float32 in [0, 1]
    tables: (L, HASHMAP_SIZE, F) bfloat16
    returns (L * F, N) bfloat16   -- ready for the lane-dense MLP kernel.
    """
    corners = jnp.array(
        [[i, j, k] for i in (0, 1) for j in (0, 1) for k in (0, 1)],
        dtype=jnp.uint32,
    )  # (8, 3)
    primes = jnp.array(_PRIMES, dtype=jnp.uint32)

    feats = []  # list of 32 arrays, each (N,)
    for level in range(N_LEVELS):
        scale_f = BASE_RES * (PER_LEVEL_SCALE ** level) - 1.0
        res = int(math.ceil(scale_f)) + 1

        pos = x01 * jnp.float32(scale_f) + 0.5
        pos_floor = jnp.floor(pos)
        frac = pos - pos_floor                      # (N, 3) f32
        grid = pos_floor.astype(jnp.uint32)         # (N, 3)

        cg = grid[:, None, :] + corners[None, :, :]  # (N, 8, 3)

        if res ** 3 <= HASHMAP_SIZE:
            # dense indexing for coarse levels
            idx = (cg[..., 0]
                   + cg[..., 1] * jnp.uint32(res)
                   + cg[..., 2] * jnp.uint32(res * res))
        else:
            # spatial hash for fine levels (uint32 wrap-around like tcnn)
            idx = ((cg[..., 0] * primes[0])
                   ^ (cg[..., 1] * primes[1])
                   ^ (cg[..., 2] * primes[2]))
        idx = (idx % jnp.uint32(HASHMAP_SIZE)).astype(jnp.int32)       # (N, 8)

        corner_f = jnp.take(tables[level], idx, axis=0).astype(jnp.float32)  # (N, 8, F)

        # trilinear interpolation weights (f32 — portable to v5e VPU, no bf16 VALU)
        w = jnp.where(corners[None, :, :] == 1, frac[:, None, :], 1.0 - frac[:, None, :])
        w = jnp.prod(w, axis=-1)                     # (N, 8)

        fl = jnp.sum(corner_f * w[..., None], axis=1)  # (N, F) f32
        for f in range(F_PER_LEVEL):
            feats.append(fl[:, f])                   # (N,)

    # Single cheap stack -> (32, N), cast once to bf16. No big (N,32) transpose pass.
    return jnp.stack(feats, axis=0).astype(jnp.bfloat16)


# ------------------------------- Pallas MLP kernel -------------------------- #

HIDDEN = 64
HEAD_ROWS = 8           # head weights replicated into an 8-sublane block for the MXU
DEFAULT_TILE_N = 8192   # lane tile (multiple of 128). ~8 MiB working set -> fits the
                        # 32 MiB scoped-VMEM budget on v5e/v6e/v7x. Sweep 4K/8K/16K.


def _round_up(x, m):
    return ((x + m - 1) // m) * m


def _mlp_kernel(x_ref, w0_ref, w1_ref, w2_ref, o_ref):
    # x:  (32, T)  bf16   (features on sublanes, points on lanes)
    # w0: (64, 32) bf16   w1: (64, 64) bf16   w2: (8, 64) bf16 (row 0 = head)
    # o:  (1, T)   f32    (lane-dense output row)
    h = jnp.dot(w0_ref[...], x_ref[...], preferred_element_type=jnp.float32)   # (64, T) f32
    h = jnp.maximum(h, 0.0).astype(jnp.bfloat16)                               # fused ReLU+cast
    h = jnp.dot(w1_ref[...], h, preferred_element_type=jnp.float32)            # (64, T) f32
    h = jnp.maximum(h, 0.0).astype(jnp.bfloat16)
    # 64 -> 1 head on the (otherwise idle) MXU: (8,64)x(64,T) -> take sublane 0.
    out8 = jnp.dot(w2_ref[...], h, preferred_element_type=jnp.float32)         # (8, T) f32
    o_ref[...] = out8[0:1, :]


def sdf_mlp(feats_t, w0, w1, w2, tile_n=DEFAULT_TILE_N):
    """feats_t: (32, N) bf16 (feature-major).  Returns (N, 1) f32."""
    d, n = feats_t.shape
    assert d == ENC_DIM

    w0t = w0.T.astype(jnp.bfloat16)                 # (64, 32)
    w1t = w1.T.astype(jnp.bfloat16)                 # (64, 64)
    w2r = (jnp.zeros((HEAD_ROWS, HIDDEN), jnp.float32)
           .at[0].set(w2[:, 0])
           .astype(jnp.bfloat16))                   # (8, 64), row 0 is the head

    # Pad only to a 128-lane multiple; the grid handles a ragged last block.
    n128 = _round_up(max(n, 1), 128)
    tile = min(tile_n, n128)
    if n128 <= tile and n128 >= 2 * 128:
        # Guarantee >= 2 grid steps so "parallel" can shard across v7x's 2 TCs.
        tile = _round_up(n128 // 2, 128)
    if n128 != n:
        feats_t = jnp.pad(feats_t, ((0, 0), (0, n128 - n)))

    grid = pl.cdiv(n128, tile)

    flops = 2 * n * (ENC_DIM * HIDDEN + HIDDEN * HIDDEN + HIDDEN * HEAD_ROWS)
    bytes_accessed = int(feats_t.size * 2 + n128 * 4
                         + (w0t.size + w1t.size + w2r.size) * 2)

    out_t = pl.pallas_call(
        _mlp_kernel,
        out_shape=jax.ShapeDtypeStruct((1, n128), jnp.float32),
        grid=(grid,),
        in_specs=[
            pl.BlockSpec((ENC_DIM, tile), lambda i: (0, i)),
            # Constant-index weight blocks (~12 KiB total): Pallas does not
            # re-DMA blocks whose index map is unchanged across steps.
            pl.BlockSpec((HIDDEN, ENC_DIM), lambda i: (0, 0)),
            pl.BlockSpec((HIDDEN, HIDDEN), lambda i: (0, 0)),
            pl.BlockSpec((HEAD_ROWS, HIDDEN), lambda i: (0, 0)),
        ],
        out_specs=pl.BlockSpec((1, tile), lambda i: (0, i)),
        compiler_params=pltpu.CompilerParams(
            dimension_semantics=("parallel",),
            vmem_limit_bytes=32 * 1024 * 1024,   # explicit budget; safe on v5e/v6e/v7x
        ),
        cost_estimate=pl.CostEstimate(
            flops=int(flops), transcendentals=0, bytes_accessed=bytes_accessed),
    )(feats_t, w0t, w1t, w2r)

    return out_t[:, :n].T                            # (N, 1)


# ------------------------------- full forward ------------------------------- #

def sdf_network_forward(x, params, clip_sdf=None):
    """x: (N, 3) float32 in [-1, 1]. Returns (N, 1) float32."""
    x01 = (x + 1.0) / 2.0
    feats_t = hash_encode(x01, params["tables"])          # (32, N) bf16
    h = sdf_mlp(feats_t, params["w0"], params["w1"], params["w2"])
    if clip_sdf is not None:
        h = jnp.clip(h, -clip_sdf, clip_sdf)
    return h


def init_params(key):
    k_tab, k0, k1, k2 = jax.random.split(key, 4)
    tables = jax.random.uniform(
        k_tab, (N_LEVELS, HASHMAP_SIZE, F_PER_LEVEL),
        minval=-1e-4, maxval=1e-4, dtype=jnp.float32,
    ).astype(jnp.bfloat16)   # tcnn-style half-precision hash tables

    def he(k, shape):
        fan_in = shape[0]
        return jax.random.normal(k, shape, jnp.float32) * jnp.sqrt(2.0 / fan_in)

    return {
        "tables": tables,
        "w0": he(k0, (ENC_DIM, HIDDEN)),
        "w1": he(k1, (HIDDEN, HIDDEN)),
        "w2": he(k2, (HIDDEN, 1)),
    }


if __name__ == "__main__":
    key = jax.random.PRNGKey(0)
    k_param, k_x = jax.random.split(key)

    params = init_params(k_param)

    # Non-multiple-of-128 N: exercises lane padding, the >=2-grid-step split,
    # and the ragged last block path.
    N = 300
    x = jax.random.uniform(k_x, (N, 3), minval=-1.0, maxval=1.0, dtype=jnp.float32)

    fwd = jax.jit(lambda xx, pp: sdf_network_forward(xx, pp, clip_sdf=None))
    out = jax.block_until_ready(fwd(x, params))
    assert out.shape == (N, 1) and out.dtype == jnp.float32

    # Reference: plain-JAX MLP mirroring the kernel's bf16 rounding points.
    feats_t = hash_encode((x + 1.0) / 2.0, params["tables"])   # (32, N) bf16
    f = feats_t.astype(jnp.float32).T                          # (N, 32)
    w0f = params["w0"].astype(jnp.bfloat16).astype(jnp.float32)
    w1f = params["w1"].astype(jnp.bfloat16).astype(jnp.float32)
    w2f = params["w2"].astype(jnp.bfloat16).astype(jnp.float32)
    h = jnp.maximum(f @ w0f, 0.0).astype(jnp.bfloat16).astype(jnp.float32)
    h = jnp.maximum(h @ w1f, 0.0).astype(jnp.bfloat16).astype(jnp.float32)
    ref = h @ w2f
    assert jnp.allclose(out, ref, atol=1e-5, rtol=1e-2), (
        float(jnp.max(jnp.abs(out - ref))))

    print("KERNEL_OK")
</pallas_src>

<mosaic_0001>
module attributes {stable_mosaic.version = 11 : i64} {
  func.func @_mlp_kernel(%arg0: i32, %arg1: memref<32x256xbf16, #tpu.memory_space<vmem>>, %arg2: memref<64x32xbf16, #tpu.memory_space<vmem>>, %arg3: memref<64x64xbf16, #tpu.memory_space<vmem>>, %arg4: memref<8x64xbf16, #tpu.memory_space<vmem>>, %arg5: memref<1x256xf32, #tpu.memory_space<vmem>>) attributes {dimension_semantics = [#tpu.dimension_semantics<parallel>], iteration_bounds = array<i64: 2>, scalar_prefetch = 0 : i64, scratch_operands = 0 : i64, tpu.core_type = #tpu.core_type<tc>, window_params = [{transform_indices = @transform_0, window_bounds = array<i64: 32, 256>}, {pipeline_mode = #tpu.pipeline_mode<synchronous>, transform_indices = @transform_1, window_bounds = array<i64: 64, 32>}, {pipeline_mode = #tpu.pipeline_mode<synchronous>, transform_indices = @transform_2, window_bounds = array<i64: 64, 64>}, {pipeline_mode = #tpu.pipeline_mode<synchronous>, transform_indices = @transform_3, window_bounds = array<i64: 8, 64>}, {transform_indices = @transform_4, window_bounds = array<i64: 1, 256>}]} {
    %c0 = arith.constant 0 : index
    %c0_0 = arith.constant 0 : index
    %0 = vector.load %arg2[%c0, %c0_0] : memref<64x32xbf16, #tpu.memory_space<vmem>>, vector<64x32xbf16>
    %c0_1 = arith.constant 0 : index
    %c0_2 = arith.constant 0 : index
    %1 = vector.load %arg1[%c0_1, %c0_2] : memref<32x256xbf16, #tpu.memory_space<vmem>>, vector<32x256xbf16>
    %cst = arith.constant dense<0.000000e+00> : vector<64x256xf32>
    %2 = tpu.matmul %0, %1, %cst {dimension_numbers = #tpu.dot_dimension_numbers<[1], [0], [0], [1], [0, 0, 1, 1], [], []>} : vector<64x32xbf16>, vector<32x256xbf16>, vector<64x256xf32> -> vector<64x256xf32>
    %cst_3 = arith.constant 0.000000e+00 : f32
    %3 = vector.broadcast %cst_3 : f32 to vector<64x256xf32>
    %4 = arith.maximumf %2, %3 : vector<64x256xf32>
    %5 = arith.truncf %4 : vector<64x256xf32> to vector<64x256xbf16>
    %c0_4 = arith.constant 0 : index
    %c0_5 = arith.constant 0 : index
    %6 = vector.load %arg3[%c0_4, %c0_5] : memref<64x64xbf16, #tpu.memory_space<vmem>>, vector<64x64xbf16>
    %cst_6 = arith.constant dense<0.000000e+00> : vector<64x256xf32>
    %7 = tpu.matmul %6, %5, %cst_6 {dimension_numbers = #tpu.dot_dimension_numbers<[1], [0], [0], [1], [0, 0, 1, 1], [], []>} : vector<64x64xbf16>, vector<64x256xbf16>, vector<64x256xf32> -> vector<64x256xf32>
    %cst_7 = arith.constant 0.000000e+00 : f32
    %8 = vector.broadcast %cst_7 : f32 to vector<64x256xf32>
    %9 = arith.maximumf %7, %8 : vector<64x256xf32>
    %10 = arith.truncf %9 : vector<64x256xf32> to vector<64x256xbf16>
    %c0_8 = arith.constant 0 : index
    %c0_9 = arith.constant 0 : index
    %11 = vector.load %arg4[%c0_8, %c0_9] : memref<8x64xbf16, #tpu.memory_space<vmem>>, vector<8x64xbf16>
    %cst_10 = arith.constant dense<0.000000e+00> : vector<8x256xf32>
    %12 = tpu.matmul %11, %10, %cst_10 {dimension_numbers = #tpu.dot_dimension_numbers<[1], [0], [0], [1], [0, 0, 1, 1], [], []>} : vector<8x64xbf16>, vector<64x256xbf16>, vector<8x256xf32> -> vector<8x256xf32>
    %13 = vector.extract_strided_slice %12 {offsets = [0, 0], sizes = [1, 256], strides = [1, 1]} : vector<8x256xf32> to vector<1x256xf32>
    %c0_11 = arith.constant 0 : index
    %c0_12 = arith.constant 0 : index
    %14 = vector.load %arg5[%c0_11, %c0_12] : memref<1x256xf32, #tpu.memory_space<vmem>>, vector<1x256xf32>
    tpu.vector_store %arg5[%c0_11, %c0_12], %13 {strides = array<i32>} : memref<1x256xf32, #tpu.memory_space<vmem>>, vector<1x256xf32>,
    return
  }
  func.func @transform_0(%arg0: i32) -> (i32, i32) {
    %c0_i32 = arith.constant 0 : i32
    %c0_i32_0 = arith.constant 0 : i32
    return %c0_i32, %arg0 : i32, i32
  }
  func.func @transform_1(%arg0: i32) -> (i32, i32) {
    %c0_i32 = arith.constant 0 : i32
    %c0_i32_0 = arith.constant 0 : i32
    %c0_i32_1 = arith.constant 0 : i32
    return %c0_i32, %c0_i32_0 : i32, i32
  }
  func.func @transform_2(%arg0: i32) -> (i32, i32) {
    %c0_i32 = arith.constant 0 : i32
    %c0_i32_0 = arith.constant 0 : i32
    %c0_i32_1 = arith.constant 0 : i32
    return %c0_i32, %c0_i32_0 : i32, i32
  }
  func.func @transform_3(%arg0: i32) -> (i32, i32) {
    %c0_i32 = arith.constant 0 : i32
    %c0_i32_0 = arith.constant 0 : i32
    %c0_i32_1 = arith.constant 0 : i32
    return %c0_i32, %c0_i32_0 : i32, i32
  }
  func.func @transform_4(%arg0: i32) -> (i32, i32) {
    %c0_i32 = arith.constant 0 : i32
    %c0_i32_0 = arith.constant 0 : i32
    return %c0_i32, %arg0 : i32, i32
  }
}

</mosaic_0001>

<bundles_post_ra>
// kernel: squeeze.31
= control target key start
LH: loop header
LB: loop body
LE: loop exit
PB: predicated region body
PF: predicated region fallthrough
CT: control target
= control target key end

     0   :  { %2 = vsyncpa [#allocation1], 0  ;;  %v67_v5 = vmov 0.0   ;;  %s96_s0 = inlined_call_operand.vmem [shape: bf16[300], index: 0, kind: input, shape index: {}]   ;;  %s97_s1 = inlined_call_operand.hbm [shape: bf16[1,300], index: 1, kind: output, shape index: {}]  }
   0x1   :  { %v5_v0 = vld [vmem:[%s96_s0] ss:$0 sm:$0xff]  ;;  %v39_v3 = vld [vmem:[%s96_s0 + $0x1] ss:$0 sm:$0xff]  ;;  %s66_s0 = smov [#allocation0]  }
   0x2   :  { %v6_v1 = vunpack.i.l.bf16 %v5_v0  ;;  %v15_v2 = vunpack.i.h.bf16 %v5_v0  ;;  %s33_s10 = sshll.u32 %s66_s0, 4  ;;  %v22_v4 = vunpack.i.l.bf16 %v39_v3  ;;  %s34_s10 = int_to_ptr.vmem [resolvable:$true] %s33_s10 }
   0x3   :  { %s42_s11 = scalar_lea.vmem %s34_s10, 48  ;;  %s46_s12 = scalar_lea.vmem %s34_s10, 64 }
   0x4   :  { %v10_v6 = vpack.c.bf16 %v67_v5, %v6_v1  ;;  %v18_v7 = vpack.c.bf16 %v67_v5, %v15_v2  ;;  %v27_v8 = vpack.c.bf16 %v67_v5, %v22_v4  ;;  %p43_p0 = scmp.ne.s32.totalorder %s34_s10, %s42_s11  ;;  %p47_p1 = scmp.lt.s32.totalorder %s34_s10, %s34_s10 }
   0x5   :  { %p48_p2 = scmp.lt.s32.totalorder %s46_s12, %s42_s11 }
   0x6   :  { %11 = vst [vmem:[#allocation0] sm:$0x1] %v10_v6  ;;  %19 = vst [vmem:[#allocation0 + $0x1] sm:$0x1] %v18_v7 }
   0x7   :  { %28 = vst [vmem:[#allocation0 + $0x2] sm:$0x1] %v27_v8  ;;  %p49_p3 = por %p48_p2, %p47_p1 }
   0x9   :  { %p50_p4 = pnand %p49_p3, %p43_p0 }
   0xb   :  { %53 = shalt.err (!%p50_p4)
}
   0xc   :  { %s54_s15 = scalar_lea.hbm %s97_s1, 48 }
   0xd   :  { %p55_p5 = scmp.ne.s32.totalorder %s97_s1, %s54_s15  ;;  %p58_p6 = scmp.lt.u32.totalorder %s54_s15, %s97_s1 }
   0xf   :  { %p60_p7 = pnand %p58_p6, %p55_p5 }
  0x11   :  { %63 = shalt.err (!%p60_p7)
}
  0x12   :  { %36 = dma.vmem_to_hbm [thread:$0]  %s34_s10, 48, %s97_s1, [#allocation1]  }
  0x13   :  { %64 = dma.done.wait [#allocation1], 48  }
  0x14   :  { %65 = vsyncadd [#allocation1], 4294967248 }
  0x15   :  { %38 = vsyncpa [#allocation1], 1 }

// kernel: squeeze.7
= control target key start
LH: loop header
LB: loop body
LE: loop exit
PB: predicated region body
PF: predicated region fallthrough
CT: control target
= control target key end

     0   :  { %v32_v5 = vmov 0.0   ;;  %s58_s0 = inlined_call_operand.vmem [shape: bf16[300], index: 0, kind: input, shape index: {}]   ;;  %s59_s1 = inlined_call_operand.vmem [shape: bf16[1,300], index: 1, kind: output, shape index: {}]  }
   0x1   :  { %v4_v0 = vld [vmem:[%s58_s0] ss:$0 sm:$0xff]  ;;  %v29_v1 = vld [vmem:[%s58_s0 + $0x1] ss:$0 sm:$0xff] }
   0x2   :  { %v5_v2 = vunpack.i.l.bf16 %v4_v0  ;;  %v14_v3 = vunpack.i.h.bf16 %v4_v0  ;;  %v21_v4 = vunpack.i.l.bf16 %v29_v1 }
   0x4   :  { %v9_v6 = vpack.c.bf16 %v32_v5, %v5_v2  ;;  %v17_v7 = vpack.c.bf16 %v32_v5, %v14_v3  ;;  %v26_v8 = vpack.c.bf16 %v32_v5, %v21_v4 }
   0x6   :  { %10 = vst [vmem:[%s59_s1] sm:$0x1] %v9_v6  ;;  %28 = vst [vmem:[%s59_s1 + $0x1] sm:$0x1] %v17_v7 }
   0x7   :  { %30 = vst [vmem:[%s59_s1 + $0x2] sm:$0x1] %v26_v8 }

// kernel: _lambda_.1
= control target key start
LH: loop header
LB: loop body
LE: loop exit
PB: predicated region body
PF: predicated region fallthrough
CT: control target
= control target key end

     0   :  { %s2340_s15 = smov 0   ;;  %s2342_s16 = smov 0   ;;  %s3122_s0 = inlined_call_operand.vmem [shape: bf16[32,384], index: 0, kind: input, shape index: {}]   ;;  %s3123_s1 = inlined_call_operand.vmem [shape: bf16[64,32], index: 1, kind: input, shape index: {}]   ;;  %s3124_s2 = inlined_call_operand.vmem [shape: bf16[64,64], index: 2, kind: input, shape index: {}]   ;;  %s3125_s3 = inlined_call_operand.vmem [shape: bf16[8,64], index: 3, kind: input, shape index: {}]   ;;  %s3126_s4 = inlined_call_operand.vmem [shape: f32[1,384], index: 4, kind: output, shape index: {}]  }
   0x1   :  { %s2344_s17 = smov 0  }
   0x2 LB: > { %s1638_s18 = sadd.s32 4294967295, %s2179_s17   ;;  %s2357_s19 = sadd.s32 1, %s2179_s17   ;;  %s2179_s17 = sphi %s2344_s17, %s3152_s17   ;;  %s2175_s16 = sphi %s2342_s16, %s3151_s16   ;;  %s2171_s15 = sphi %s2340_s15, %s3150_s15  }
   0x3   : > { %s18_s20 = ssub.s32 %s2179_s17, %s2357_s19  ;;  %s21_s21 = sadd.s32 1, %s2175_s16 }
   0x4   : > { %p19_p0 = scmp.eq.s32.totalorder %s18_s20, 0  ;;  %p28_p1 = scmp.ne.s32.totalorder %s2175_s16, %s2171_s15 }
   0x5   : > { %p29_p2 = scmp.eq.s32.totalorder %s2179_s17, 0  ;;  %p121_p3 = scmp.eq.s32.totalorder %s1638_s18, 1 }
   0x6   : > { %s2368_s22 = scalar_select %p19_p0, %s2175_s16, %s21_s21  }
   0x7   : > { %p30_p4 = por %p29_p2, %p28_p1  ;;  %p2370_p5 = por %p121_p3, %p28_p1 }
   0x8   : > { %p1641_p6 = scmp.ge.s32.totalorder %s2179_s17, 2 }
   0xa   : > { %152 = sbr.rel (%p1641_p6) target bundleno = 149 (0x95), region = 28 }
  0x11   : > { %155 = sbr.rel (!%p30_p4) target bundleno = 149 (0x95), region = 32  ;;  %s157_s24 = sand.u32 (%p30_p4), 1, %s2175_s16  }
  0x12   : > { %s1643_s25 = sshll.u32 (%p30_p4), %s2179_s17, 1  ;;  %s1642_s26 = sshll.u32 (%p30_p4), %s157_s24, 5 }
  0x13   : > { %s161_s27 = ssub.s32 (%p30_p4), 3, %s1643_s25  ;;  %s1720_s28 = sshll.u32 (%p30_p4), %s2179_s17, 3 }
  0x14   : > { %p162_p7 = scmp.lt.s32.totalorder (%p30_p4), %s161_s27, 2  ;;  %s2381_s5 = scalar_lea.vmem (%p30_p4), %s3122_s0, %s1720_s28  }
  0x15   : > { %s2385_s8 = scalar_lea.vmem (%p30_p4), [#allocation2], %s1642_s26  }
  0x18   : > { %s3154_s27 = smov (!%p162_p7, %s161_s27), 2 }
  0x19   : > { %s1644_s6 = sshll.u32 %s3154_s27, 8  ;;  %s2383_s7 = sshll.u32 %s3154_s27, 2 }
  0x1a   : > { %p1648_p8 = scmp.eq.s32.totalorder %s1644_s6, 0 }
  0x1b   : > { %p172_p9 = scmp.lt.u32.totalorder (!%p1648_p8), %s2383_s7, 8 }
  0x1c   : > { %171 = sbr.rel (%p1648_p8) target bundleno = 149 (0x95), region = 36 }
  0x23   : > { %175 = sbr.rel (%p172_p9) target bundleno = 140 (0x8c), region = 40  ;;  %s2389_s9 = sand.u32 (!%p172_p9), 7, %s2383_s7  }
  0x24   : > { %p197_p10 = scmp.eq.s32.totalorder (!%p172_p9), %s2389_s9, 0  ;;  %p1649_p11 = scmp.ne.s32.totalorder (!%p172_p9), %s2389_s9, 0 }
  0x2a   : > { %200 = sbr.rel (%p1649_p11) target bundleno = 88 (0x58), region = 55  ;;  %s201_s10 = sshrl.u32 (!%p1649_p11), %s2383_s7, 3 }
  0x2b   : > { %s2396_s11 = sshrl.u32 (!%p1649_p11), %s201_s10, 4 }
  0x2c   : > { %p1650_p12 = scmp.le.s32.totalorder (!%p1649_p11), %s2396_s11, 0 }
  0x31   : > { %1511 = sbr.rel (%p1650_p12) target bundleno = 68 (0x44), region = 233  ;;  %s3128_s12 = smov (!%p1650_p12), %s2385_s8 }
  0x32   : > { %s3129_s13 = smov (!%p1650_p12), %s2381_s5  ;;  %s2405_s14 = smov (!%p1650_p12), 0  }
  0x33   : > { %s2407_s20 = smov (!%p1650_p12), 0  }
  0x38 LB: >> { %v214_v0 = vld [vmem:[%s2187_s13] sm:$0xff]  ;;  %v246_v1 = vld [vmem:[%s2187_s13 + $0xc] sm:$0xff]  ;;  %v278_v2 = vld [vmem:[%s2187_s13 + $0x18] sm:$0xff]  ;;  %s342_s21 = sadd.s32 1, %s2191_s14  ;;  %s208_s20 = sadd.s32 1, %s2195_s20   ;;  %s2195_s20 = sphi %s2407_s20, %s208_s20   ;;  %s2191_s14 = sphi %s2405_s14, %s3130_s14   ;;  %s2187_s13 = sphi %s3129_s13, %s347_s13   ;;  %s2183_s12 = sphi %s3128_s12, %s348_s12  }
  0x39   : >> { %215 = vst [vmem:[%s2183_s12] sm:$0xff] %v214_v0  ;;  %247 = vst [vmem:[%s2183_s12 + $0x8] sm:$0xff] %v246_v1  ;;  %v310_v3 = vld [vmem:[%s2187_s13 + $0x24] sm:$0xff]  ;;  %v312_v4 = vld [vmem:[%s2187_s13 + $0x2c] sm:$0xff]  ;;  %p343_p13 = scmp.ge.s32.totalorder %s342_s21, %s2396_s11  ;;  %p207_p0 = scmp.ge.s32.totalorder %s208_s20, %s2396_s11 }
  0x3a   : >> { %279 = vst [vmem:[%s2183_s12 + $0x10] sm:$0xff] %v278_v2  ;;  %v314_v5 = vld [vmem:[%s2187_s13 + $0x34] sm:$0xff]  ;;  %311 = vst [vmem:[%s2183_s12 + $0x18] sm:$0xff] %v310_v3  ;;  %v316_v6 = vld [vmem:[%s2187_s13 + $0x3c] sm:$0xff] }
  0x3b   : >> { %313 = vst [vmem:[%s2183_s12 + $0x20] sm:$0xff] %v312_v4  ;;  %315 = vst [vmem:[%s2183_s12 + $0x28] sm:$0xff] %v314_v5  ;;  %v318_v7 = vld [vmem:[%s2187_s13 + $0x44] sm:$0xff]  ;;  %v320_v8 = vld [vmem:[%s2187_s13 + $0x4c] sm:$0xff]  ;;  %s3156_s21 = smov (%p343_p13, %s342_s21), 0 }
  0x3c   : >> { %317 = vst [vmem:[%s2183_s12 + $0x30] sm:$0xff] %v316_v6  ;;  %319 = vst [vmem:[%s2183_s12 + $0x38] sm:$0xff] %v318_v7  ;;  %v322_v9 = vld [vmem:[%s2187_s13 + $0x54] sm:$0xff]  ;;  %v324_v10 = vld [vmem:[%s2187_s13 + $0x5c] sm:$0xff]  ;;  %s1651_s24 = sshll.u32 %s3156_s21, 7  ;;  %s3130_s14 = smov %s3156_s21 }
  0x3d   : >> { %321 = vst [vmem:[%s2183_s12 + $0x40] sm:$0xff] %v320_v8  ;;  %v326_v11 = vld [vmem:[%s2187_s13 + $0x64] sm:$0xff]  ;;  %323 = vst [vmem:[%s2183_s12 + $0x48] sm:$0xff] %v322_v9  ;;  %v328_v12 = vld [vmem:[%s2187_s13 + $0x6c] sm:$0xff]  ;;  %210 = sbr.rel (!%p207_p0) target bundleno = 56 (0x38), region = 239 }
  0x3e   : >> { %325 = vst [vmem:[%s2183_s12 + $0x50] sm:$0xff] %v324_v10  ;;  %327 = vst [vmem:[%s2183_s12 + $0x58] sm:$0xff] %v326_v11  ;;  %v330_v13 = vld [vmem:[%s2187_s13 + $0x74] sm:$0xff]  ;;  %v332_v14 = vld [vmem:[%s2187_s13 + $0x7c] sm:$0xff] }
  0x3f   : >> { %329 = vst [vmem:[%s2183_s12 + $0x60] sm:$0xff] %v328_v12  ;;  %331 = vst [vmem:[%s2183_s12 + $0x68] sm:$0xff] %v330_v13  ;;  %v334_v15 = vld [vmem:[%s2187_s13 + $0x84] sm:$0xff]  ;;  %v336_v16 = vld [vmem:[%s2187_s13 + $0x8c] sm:$0xff] }
  0x40   : >> { %333 = vst [vmem:[%s2183_s12 + $0x70] sm:$0xff] %v332_v14  ;;  %v338_v17 = vld [vmem:[%s2187_s13 + $0x94] sm:$0xff]  ;;  %335 = vst [vmem:[%s2183_s12 + $0x78] sm:$0xff] %v334_v15  ;;  %v340_v18 = vld [vmem:[%s2187_s13 + $0x9c] sm:$0xff]  ;;  %s347_s13 = scalar_lea.vmem %s2381_s5, %s1651_s24  }
  0x41   : >> { %337 = vst [vmem:[%s2183_s12 + $0x80] sm:$0xff] %v336_v16  ;;  %339 = vst [vmem:[%s2183_s12 + $0x88] sm:$0xff] %v338_v17 }
  0x42   : >> { %341 = vst [vmem:[%s2183_s12 + $0x90] sm:$0xff] %v340_v18  ;;  %s348_s12 = scalar_lea.vmem %s2385_s8, %s1651_s24 [#allocation2]  }
  0x44 PF: > { %s2475_s25 = sand.u32 15, %s201_s10   ;;  %s1721_s26 = sshll.u32 %s2396_s11, 11 }
  0x45   : > { %s353_s27 = sshra.s32 %s1721_s26, 4  ;;  %p1656_p1 = scmp.le.s32.totalorder %s2475_s25, 0 }
  0x46   : > { %s2479_s28 = scalar_lea.vmem %s2381_s5, %s353_s27   ;;  %s2482_s29 = scalar_lea.vmem %s2385_s8, %s353_s27 [#allocation2]  }
  0x47   : > { %1525 = sbr.rel (%p1656_p1) target bundleno = 88 (0x58), region = 244  ;;  %s3131_s30 = smov (!%p1656_p1), %s2482_s29 }
  0x48   : > { %s3132_s6 = smov (!%p1656_p1), %s2479_s28  ;;  %s2491_s12 = smov (!%p1656_p1), 0  }
  0x49   : > { %s2209_s13 = smov (!%p1656_p1), 0  }
  0x4e LB: >> { %v369_v19 = vld [vmem:[%s2203_s6] sm:$0xff]  ;;  %v371_v20 = vld [vmem:[%s2203_s6 + $0xc] sm:$0xff]  ;;  %v373_v21 = vld [vmem:[%s2203_s6 + $0x18] sm:$0xff]  ;;  %s377_s10 = sadd.s32 1, %s2207_s12  ;;  %s363_s13 = sadd.s32 1, %s2211_s13   ;;  %s2211_s13 = sphi %s2209_s13, %s363_s13   ;;  %s2207_s12 = sphi %s2491_s12, %s3133_s12   ;;  %s2203_s6 = sphi %s3132_s6, %s382_s6   ;;  %s2199_s30 = sphi %s3131_s30, %s383_s30  }
  0x4f   : >> { %370 = vst [vmem:[%s2199_s30] sm:$0xff] %v369_v19  ;;  %372 = vst [vmem:[%s2199_s30 + $0x8] sm:$0xff] %v371_v20  ;;  %v375_v22 = vld [vmem:[%s2203_s6 + $0x24] sm:$0xff]  ;;  %p378_p2 = scmp.ge.s32.totalorder %s377_s10, %s2475_s25  ;;  %p362_p3 = scmp.ge.s32.totalorder %s363_s13, %s2475_s25 }
  0x50   : >> { %374 = vst [vmem:[%s2199_s30 + $0x10] sm:$0xff] %v373_v21  ;;  %376 = vst [vmem:[%s2199_s30 + $0x18] sm:$0xff] %v375_v22 }
  0x51   : >> { %s3158_s10 = smov (%p378_p2, %s377_s10), 0  ;;  %365 = sbr.rel (!%p362_p3) target bundleno = 78 (0x4e), region = 250 }
  0x52   : >> { %s1657_s11 = sshll.u32 %s3158_s10, 3  ;;  %s3133_s12 = smov %s3158_s10 }
  0x53   : >> { %s382_s6 = scalar_lea.vmem %s2479_s28, %s1657_s11   ;;  %s383_s30 = scalar_lea.vmem %s2482_s29, %s1657_s11 [#allocation2]  }
  0x58 PF: > { %386 = sbr.rel (%p197_p10) target bundleno = 140 (0x8c), region = 73  ;;  %s388_s14 = ssub.s32 (!%p197_p10), %s2383_s7, %s2389_s9 }
  0x59   : > { %s392_s20 = sshrl.u32 (!%p197_p10), %s2383_s7, 3  ;;  %s2512_s21 = scalar_lea.vmem (!%p197_p10), %s2381_s5, %s388_s14 }
  0x5a   : > { %s2515_s24 = scalar_lea.vmem (!%p197_p10), %s2385_s8, %s388_s14 [#allocation2]  ;;  %s2519_s26 = sshrl.u32 (!%p197_p10), %s392_s20, 4 }
  0x5b   : > { %p1659_p4 = scmp.le.s32.totalorder (!%p197_p10), %s2519_s26, 0 }
  0x5f   : > { %1539 = sbr.rel (%p1659_p4) target bundleno = 114 (0x72), region = 255  ;;  %s3134_s25 = smov (!%p1659_p4), %s2385_s8 }
  0x60   : > { %s3135_s27 = smov (!%p1659_p4), %s2381_s5  ;;  %s2528_s28 = smov (!%p1659_p4), 0  }
  0x61   : > { %s2530_s29 = smov (!%p1659_p4), 0  }
  0x66 LB: >> { %v405_v23 = vld [vmem:[%s2219_s27] sm:$0xff]  ;;  %v437_v24 = vld [vmem:[%s2219_s27 + $0xc] sm:$0xff]  ;;  %v469_v25 = vld [vmem:[%s2219_s27 + $0x18] sm:$0xff]  ;;  %s533_s30 = sadd.s32 1, %s2223_s28  ;;  %s399_s29 = sadd.s32 1, %s2227_s29   ;;  %s2227_s29 = sphi %s2530_s29, %s399_s29   ;;  %s2223_s28 = sphi %s2528_s28, %s3136_s28   ;;  %s2219_s27 = sphi %s3135_s27, %s538_s27   ;;  %s2215_s25 = sphi %s3134_s25, %s539_s25  }
  0x67   : >> { %406 = vst [vmem:[%s2215_s25] sm:$0xff] %v405_v23  ;;  %438 = vst [vmem:[%s2215_s25 + $0x8] sm:$0xff] %v437_v24  ;;  %v501_v26 = vld [vmem:[%s2219_s27 + $0x24] sm:$0xff]  ;;  %v503_v27 = vld [vmem:[%s2219_s27 + $0x2c] sm:$0xff]  ;;  %p534_p6 = scmp.ge.s32.totalorder %s533_s30, %s2519_s26  ;;  %p398_p7 = scmp.ge.s32.totalorder %s399_s29, %s2519_s26 }
  0x68   : >> { %470 = vst [vmem:[%s2215_s25 + $0x10] sm:$0xff] %v469_v25  ;;  %v505_v28 = vld [vmem:[%s2219_s27 + $0x34] sm:$0xff]  ;;  %502 = vst [vmem:[%s2215_s25 + $0x18] sm:$0xff] %v501_v26  ;;  %v507_v29 = vld [vmem:[%s2219_s27 + $0x3c] sm:$0xff] }
  0x69   : >> { %504 = vst [vmem:[%s2215_s25 + $0x20] sm:$0xff] %v503_v27  ;;  %506 = vst [vmem:[%s2215_s25 + $0x28] sm:$0xff] %v505_v28  ;;  %v509_v30 = vld [vmem:[%s2219_s27 + $0x44] sm:$0xff]  ;;  %v511_v31 = vld [vmem:[%s2219_s27 + $0x4c] sm:$0xff]  ;;  %s3160_s30 = smov (%p534_p6, %s533_s30), 0 }
  0x6a   : >> { %508 = vst [vmem:[%s2215_s25 + $0x30] sm:$0xff] %v507_v29  ;;  %510 = vst [vmem:[%s2215_s25 + $0x38] sm:$0xff] %v509_v30  ;;  %v513_v32 = vld [vmem:[%s2219_s27 + $0x54] sm:$0xff]  ;;  %v515_v33 = vld [vmem:[%s2219_s27 + $0x5c] sm:$0xff]  ;;  %s1660_s6 = sshll.u32 %s3160_s30, 7  ;;  %s3136_s28 = smov %s3160_s30 }
  0x6b   : >> { %512 = vst [vmem:[%s2215_s25 + $0x40] sm:$0xff] %v511_v31  ;;  %v517_v34 = vld [vmem:[%s2219_s27 + $0x64] sm:$0xff]  ;;  %514 = vst [vmem:[%s2215_s25 + $0x48] sm:$0xff] %v513_v32  ;;  %v519_v35 = vld [vmem:[%s2219_s27 + $0x6c] sm:$0xff]  ;;  %401 = sbr.rel (!%p398_p7) target bundleno = 102 (0x66), region = 261 }
  0x6c   : >> { %516 = vst [vmem:[%s2215_s25 + $0x50] sm:$0xff] %v515_v33  ;;  %518 = vst [vmem:[%s2215_s25 + $0x58] sm:$0xff] %v517_v34  ;;  %v521_v36 = vld [vmem:[%s2219_s27 + $0x74] sm:$0xff]  ;;  %v523_v37 = vld [vmem:[%s2219_s27 + $0x7c] sm:$0xff] }
  0x6d   : >> { %520 = vst [vmem:[%s2215_s25 + $0x60] sm:$0xff] %v519_v35  ;;  %522 = vst [vmem:[%s2215_s25 + $0x68] sm:$0xff] %v521_v36  ;;  %v525_v38 = vld [vmem:[%s2219_s27 + $0x84] sm:$0xff]  ;;  %v527_v39 = vld [vmem:[%s2219_s27 + $0x8c] sm:$0xff] }
  0x6e   : >> { %524 = vst [vmem:[%s2215_s25 + $0x70] sm:$0xff] %v523_v37  ;;  %v529_v40 = vld [vmem:[%s2219_s27 + $0x94] sm:$0xff]  ;;  %526 = vst [vmem:[%s2215_s25 + $0x78] sm:$0xff] %v525_v38  ;;  %v531_v41 = vld [vmem:[%s2219_s27 + $0x9c] sm:$0xff]  ;;  %s538_s27 = scalar_lea.vmem %s2381_s5, %s1660_s6  }
  0x6f   : >> { %528 = vst [vmem:[%s2215_s25 + $0x80] sm:$0xff] %v527_v39  ;;  %530 = vst [vmem:[%s2215_s25 + $0x88] sm:$0xff] %v529_v40 }
  0x70   : >> { %532 = vst [vmem:[%s2215_s25 + $0x90] sm:$0xff] %v531_v41  ;;  %s539_s25 = scalar_lea.vmem %s2385_s8, %s1660_s6 [#allocation2]  }
  0x72 PF: > { %s2598_s12 = sand.u32 15, %s392_s20   ;;  %s1723_s13 = sshll.u32 %s2519_s26, 11 }
  0x73   : > { %s544_s10 = sshra.s32 %s1723_s13, 4  ;;  %p1665_p8 = scmp.le.s32.totalorder %s2598_s12, 0 }
  0x74   : > { %s2602_s11 = scalar_lea.vmem %s2381_s5, %s544_s10   ;;  %s2605_s14 = scalar_lea.vmem %s2385_s8, %s544_s10 [#allocation2]  }
  0x75   : > { %1553 = sbr.rel (%p1665_p8) target bundleno = 134 (0x86), region = 266  ;;  %s3137_s25 = smov (!%p1665_p8), %s2605_s14 }
  0x76   : > { %s3138_s27 = smov (!%p1665_p8), %s2602_s11  ;;  %s2614_s28 = smov (!%p1665_p8), 0  }
  0x77   : > { %s2241_s29 = smov (!%p1665_p8), 0  }
  0x7c LB: >> { %v560_v42 = vld [vmem:[%s2235_s27] sm:$0xff]  ;;  %v562_v43 = vld [vmem:[%s2235_s27 + $0xc] sm:$0xff]  ;;  %v564_v44 = vld [vmem:[%s2235_s27 + $0x18] sm:$0xff]  ;;  %s568_s20 = sadd.s32 1, %s2239_s28  ;;  %s554_s29 = sadd.s32 1, %s2243_s29   ;;  %s2243_s29 = sphi %s2241_s29, %s554_s29   ;;  %s2239_s28 = sphi %s2614_s28, %s3139_s28   ;;  %s2235_s27 = sphi %s3138_s27, %s573_s27   ;;  %s2231_s25 = sphi %s3137_s25, %s574_s25  }
  0x7d   : >> { %561 = vst [vmem:[%s2231_s25] sm:$0xff] %v560_v42  ;;  %563 = vst [vmem:[%s2231_s25 + $0x8] sm:$0xff] %v562_v43  ;;  %v566_v45 = vld [vmem:[%s2235_s27 + $0x24] sm:$0xff]  ;;  %p569_p9 = scmp.ge.s32.totalorder %s568_s20, %s2598_s12  ;;  %p553_p10 = scmp.ge.s32.totalorder %s554_s29, %s2598_s12 }
  0x7e   : >> { %565 = vst [vmem:[%s2231_s25 + $0x10] sm:$0xff] %v564_v44  ;;  %567 = vst [vmem:[%s2231_s25 + $0x18] sm:$0xff] %v566_v45 }
  0x7f   : >> { %s3162_s20 = smov (%p569_p9, %s568_s20), 0  ;;  %556 = sbr.rel (!%p553_p10) target bundleno = 124 (0x7c), region = 272 }
  0x80   : >> { %s1666_s26 = sshll.u32 %s3162_s20, 3  ;;  %s3139_s28 = smov %s3162_s20 }
  0x81   : >> { %s573_s27 = scalar_lea.vmem %s2602_s11, %s1666_s26   ;;  %s574_s25 = scalar_lea.vmem %s2605_s14, %s1666_s26 [#allocation2]  }
  0x86 PF: > { %s2309_s30 = smov 0  }
  0x87   : > { %s575_s6 = sshllo.u32 %s2309_s30, %s2389_s9 }
  0x88   : > { %v584_v46 = vld [vmem:[%s2512_s21] sm:%s575_s6]  ;;  %v586_v47 = vld [vmem:[%s2512_s21 + $0xc] sm:%s575_s6] }
  0x89   : > { %585 = vst [vmem:[%s2515_s24] sm:%s575_s6] %v584_v46  ;;  %587 = vst [vmem:[%s2515_s24 + $0x8] sm:%s575_s6] %v586_v47 }
  0x8a   : > { %v588_v48 = vld [vmem:[%s2512_s21 + $0x18] sm:%s575_s6]  ;;  %v590_v49 = vld [vmem:[%s2512_s21 + $0x24] sm:%s575_s6] }
  0x8b   : > { %589 = vst [vmem:[%s2515_s24 + $0x10] sm:%s575_s6] %v588_v48  ;;  %591 = vst [vmem:[%s2515_s24 + $0x18] sm:%s575_s6] %v590_v49 }
  0x8c PF: > { %p1668_p11 = scmp.ge.u32.totalorder %s2383_s7, 8 }
  0x8d   : > { %s2310_s12 = smov (!%p1668_p11), 0  }
  0x8e   : > { %178 = sbr.rel (%p1668_p11) target bundleno = 149 (0x95), region = 44  ;;  %s179_s9 = sshllo.u32 (!%p1668_p11), %s2310_s12, %s2383_s7 }
  0x8f   : > { %v188_v50 = vld [vmem:[%s2381_s5] sm:%s179_s9] (!%p1668_p11)  ;;  %v190_v51 = vld [vmem:[%s2381_s5 + $0xc] sm:%s179_s9] (!%p1668_p11) }
  0x90   : > { %189 = vst [vmem:[%s2385_s8] sm:%s179_s9] (!%p1668_p11), %v188_v50  ;;  %191 = vst [vmem:[%s2385_s8 + $0x8] sm:%s179_s9] (!%p1668_p11), %v190_v51 }
  0x91   : > { %v192_v52 = vld [vmem:[%s2381_s5 + $0x18] sm:%s179_s9] (!%p1668_p11)  ;;  %v194_v53 = vld [vmem:[%s2381_s5 + $0x24] sm:%s179_s9] (!%p1668_p11) }
  0x92   : > { %193 = vst [vmem:[%s2385_s8 + $0x10] sm:%s179_s9] (!%p1668_p11), %v192_v52  ;;  %195 = vst [vmem:[%s2385_s8 + $0x18] sm:%s179_s9] (!%p1668_p11), %v194_v53 }
  0x95 PF: > { %p1669_p12 = scmp.ge.s32.totalorder %s2179_s17, 1  ;;  %p594_p13 = scmp.lt.s32.totalorder %s2179_s17, 3 }
  0x97   : > { %p595_p0 = pnand %p1669_p12, %p594_p13 }
  0x98   : > { %s601_s7 = sand.u32 (!%p595_p0), 1, %s2171_s15   ;;  %v2311_v54 = vmov (!%p595_p0), 0   ;;  %v2021_v59 = vld [vmem:[%s3123_s1] sm:$0xff] (!%p595_p0)   ;;  %vm688_vm0 = vcmask (!%p595_p0), 261120   ;;  %v2022_v60 = vld [vmem:[%s3123_s1 + $0x8] sm:$0xff] (!%p595_p0)   ;;  %v2023_v61 = vld [vmem:[%s3123_s1 + $0x10] sm:$0xff] (!%p595_p0)  }
  0x99   : > { %598 = sbr.rel (%p595_p0) target bundleno = 1043 (0x413), region = 98  ;;  %s1670_s21 = sshll.u32 (!%p595_p0), %s601_s7, 5  ;;  %733 = vmatprep.mubr.bf16.mxu0 (!%p595_p0), %v2311_v54  ;;  %871 = vmatprep.mubr.bf16.mxu1 (!%p595_p0), %v2311_v54  ;;  %v2024_v62 = vld [vmem:[%s3123_s1 + $0x18] sm:$0xff] (!%p595_p0)   ;;  %v2025_v39 = vld [vmem:[%s3124_s2] sm:$0xff] (!%p595_p0)   ;;  %vm826_vm1 = vcmask (!%p595_p0), 523264   ;;  %v2026_v40 = vld [vmem:[%s3124_s2 + $0x8] sm:$0xff] (!%p595_p0)  }
  0x9a   : > { %s603_s5 = scalar_lea.vmem (!%p595_p0), [#allocation2], %s1670_s21  ;;  %v2027_v41 = vld [vmem:[%s3124_s2 + $0x10] sm:$0xff] (!%p595_p0)   ;;  %v2028_v42 = vld [vmem:[%s3124_s2 + $0x18] sm:$0xff] (!%p595_p0)   ;;  %s1671_s8 = sshll.u32 (!%p595_p0), %s601_s7, 1 }
  0x9b   : > { %v2015_v55 = vld [vmem:[%s603_s5 + $0x4] ss:$8 sps:$4 sm:$0xff] (!%p595_p0)   ;;  %v2017_v56 = vld [vmem:[%s603_s5] ss:$8 sps:$4 sm:$0xff] (!%p595_p0)   ;;  %v2018_v57 = vld [vmem:[%s603_s5 + $0x14] ss:$8 sps:$4 sm:$0xff] (!%p595_p0)  }
  0x9c   : > { %701 = vmatprep.subr.bf16.mxu0 (!%p595_p0), %v2015_v55  ;;  %v2020_v58 = vld [vmem:[%s603_s5 + $0x10] ss:$8 sps:$4 sm:$0xff] (!%p595_p0)   ;;  %s2696_s24 = scalar_lea.vmem (!%p595_p0), [#allocation3], %s1671_s8  }
  0x9d   : > { %702 = vmatpush1.bf16.msra.mxu0 (!%p595_p0), %v2017_v56 }
  0x9e   : > { %703 = vmatprep.subr.bf16.mxu0 (!%p595_p0), %v2018_v57 }
  0xa0   : > { %s1694_s13 = sshll.u32 (%p2370_p5), %s1638_s18, 1 }
  0xa1   : > { %704 = vmatpush1.bf16.msra.mxu0 %v2020_v58  ;;  %s1012_s10 = ssub.s32 (%p2370_p5), 3, %s1694_s13  ;;  %s2706_s7 = scalar_lea.vmem (%p2370_p5), %s3126_s4, %s1694_s13  }
  0xa2   : > { %p1013_p1 = scmp.lt.s32.totalorder (%p2370_p5), %s1012_s10, 2 }
  0xa4   : > { %1680 = vmatmul.mubr.msk.bf16.vlgmr.msra.gmra.mrb[0].mxu0 %vm688_vm0, %v2021_v59 }
  0xa5   : > { %743 = vmatprep.mubr.bf16.mxu0 %v2311_v54 }
  0xac   : > { %1681 = vmatmul.mubr.msk.bf16.gmra.mrb[4].mxu0 %vm688_vm0, %v2022_v60 }
  0xad   : > { %753 = vmatprep.mubr.bf16.mxu0 %v2311_v54 }
  0xb4   : > { %1682 = vmatmul.mubr.msk.bf16.gmra.mrb[8].mxu0 %vm688_vm0, %v2023_v61 }
  0xb5   : > { %763 = vmatprep.mubr.bf16.mxu0 %v2311_v54 }
  0xbc   : > { %1683 = vmatmul.mubr.msk.bf16.gmra.mrb[12].mxu0 %vm688_vm0, %v2024_v62 }
  0xbd   : > { %972 = vmatprep.mubr.bf16.mxu0 %v2311_v54 }
 0x177   : > { %v735_v63 = vpop.f32.mrb[0].mxu0 }
 0x178   : > { %v737_v0 = vpop.f32.mrb[1].mxu0  ;;  %v774_v2 = vmax.f32 %v735_v63, 0.0 }
 0x179   : > { %v739_v1 = vpop.f32.mrb[2].mxu0  ;;  %v775_v5 = vmax.f32 %v737_v0, 0.0 }
 0x17a   : > { %v776_v3 = vmax.f32 %v739_v1, 0.0  ;;  %v741_v4 = vpop.f32.mrb[3].mxu0 }
 0x17b   : > { %v777_v6 = vmax.f32 %v741_v4, 0.0 }
 0x17c   : > { %v790_v7 = vpack.c.bf16 %v776_v3, %v774_v2 }
 0x17d   : > { %v791_v8 = vpack.c.bf16 %v777_v6, %v775_v5 }
 0x17f   : > { %v745_v9 = vpop.f32.mrb[4].mxu0  ;;  %839 = vmatprep.subr.bf16.mxu1 %v791_v8 }
 0x180   : > { %v747_v10 = vpop.f32.mrb[5].mxu0  ;;  %840 = vmatpush1.bf16.msra.mxu1 %v790_v7  ;;  %v778_v12 = vmax.f32 %v745_v9, 0.0 }
 0x181   : > { %v749_v11 = vpop.f32.mrb[6].mxu0  ;;  %v779_v15 = vmax.f32 %v747_v10, 0.0 }
 0x182   : > { %v780_v13 = vmax.f32 %v749_v11, 0.0  ;;  %v751_v14 = vpop.f32.mrb[7].mxu0 }
 0x183   : > { %v781_v16 = vmax.f32 %v751_v14, 0.0 }
 0x184   : > { %v792_v17 = vpack.c.bf16 %v780_v13, %v778_v12 }
 0x185   : > { %v793_v18 = vpack.c.bf16 %v781_v16, %v779_v15 }
 0x187   : > { %v755_v19 = vpop.f32.mrb[8].mxu0  ;;  %841 = vmatprep.subr.bf16.mxu1 %v793_v18 }
 0x188   : > { %v757_v20 = vpop.f32.mrb[9].mxu0  ;;  %842 = vmatpush1.bf16.msra.mxu1 %v792_v17  ;;  %v782_v22 = vmax.f32 %v755_v19, 0.0  ;;  %v936_v19 = vld [vmem:[%s3125_s3] sm:$0xf] }
 0x189   : > { %v759_v21 = vpop.f32.mrb[10].mxu0  ;;  %v783_v25 = vmax.f32 %v757_v20, 0.0  ;;  %v2312_v20 = vmov 1966171168  }
 0x18a   : > { %v784_v23 = vmax.f32 %v759_v21, 0.0  ;;  %v761_v24 = vpop.f32.mrb[11].mxu0  ;;  %v985_v21 = vunpack.c.l.s4 %v2312_v20 }
 0x18b   : > { %v785_v26 = vmax.f32 %v761_v24, 0.0 }
 0x18c   : > { %v794_v27 = vpack.c.bf16 %v784_v23, %v782_v22  ;;  %v987_v22 = vlaneseq  ;;  %v986_v23 = vunpack.c.0.s8 %v985_v21 }
 0x18d   : > { %v795_v28 = vpack.c.bf16 %v785_v26, %v783_v25 }
 0x18e   : > { %v988_v24 = vshrl.u32 %v987_v22, 7  ;;  %vm1001_vm2 = vcmp.lt.s32.totalorder %v987_v22, 256 }
 0x18f   : > { %v765_v29 = vpop.f32.mrb[12].mxu0  ;;  %843 = vmatprep.subr.bf16.mxu1 %v795_v28 }
 0x190   : > { %v767_v30 = vpop.f32.mrb[13].mxu0  ;;  %844 = vmatpush1.bf16.msra.mxu1 %v794_v27  ;;  %v786_v32 = vmax.f32 %v765_v29, 0.0  ;;  %v989_v26 = vsub.s32 %v986_v23, %v988_v24 }
 0x191   : > { %v769_v31 = vpop.f32.mrb[14].mxu0  ;;  %v787_v35 = vmax.f32 %v767_v30, 0.0 }
 0x192   : > { %v788_v33 = vmax.f32 %v769_v31, 0.0  ;;  %v771_v34 = vpop.f32.mrb[15].mxu0 }
 0x193   : > { %v789_v36 = vmax.f32 %v771_v34, 0.0 }
 0x194   : > { %v796_v37 = vpack.c.bf16 %v788_v33, %v786_v32 }
 0x195   : > { %v797_v38 = vpack.c.bf16 %v789_v36, %v787_v35 }
 0x197   : > { %845 = vmatprep.subr.bf16.mxu1 %v797_v38 }
 0x198   : > { %846 = vmatpush1.bf16.msra.mxu1 %v796_v37 }
 0x19b   : > { %1688 = vmatmul.mubr.msk.bf16.vlgmr.msra.gmra.mrb[0].mxu1 %vm826_vm1, %v2025_v39 }
 0x19c   : > { %881 = vmatprep.mubr.bf16.mxu1 %v2311_v54 }
 0x1a3   : > { %1689 = vmatmul.mubr.msk.bf16.gmra.mrb[4].mxu1 %vm826_vm1, %v2026_v40 }
 0x1a4   : > { %891 = vmatprep.mubr.bf16.mxu1 %v2311_v54 }
 0x1ab   : > { %1690 = vmatmul.mubr.msk.bf16.gmra.mrb[8].mxu1 %vm826_vm1, %v2027_v41 }
 0x1ac   : > { %901 = vmatprep.mubr.bf16.mxu1 %v2311_v54 }
 0x1b3   : > { %1691 = vmatmul.mubr.msk.bf16.gmra.mrb[12].mxu1 %vm826_vm1, %v2028_v42 }
 0x26e   : > { %v873_v43 = vpop.f32.mrb[0].mxu1 }
 0x26f   : > { %v875_v44 = vpop.f32.mrb[1].mxu1  ;;  %v912_v46 = vmax.f32 %v873_v43, 0.0 }
 0x270   : > { %v877_v45 = vpop.f32.mrb[2].mxu1  ;;  %v913_v49 = vmax.f32 %v875_v44, 0.0 }
 0x271   : > { %v914_v47 = vmax.f32 %v877_v45, 0.0  ;;  %v879_v48 = vpop.f32.mrb[3].mxu1 }
 0x272   : > { %v915_v50 = vmax.f32 %v879_v48, 0.0 }
 0x273   : > { %v928_v51 = vpack.c.bf16 %v914_v47, %v912_v46 }
 0x274   : > { %v929_v52 = vpack.c.bf16 %v915_v50, %v913_v49 }
 0x276   : > { %v883_v53 = vpop.f32.mrb[4].mxu1  ;;  %940 = vmatprep.subr.bf16.mxu0 %v929_v52 }
 0x277   : > { %v885_v55 = vpop.f32.mrb[5].mxu1  ;;  %941 = vmatpush1.bf16.msra.mxu0 %v928_v51  ;;  %v916_v56 = vmax.f32 %v883_v53, 0.0 }
 0x278   : > { %v887_v54 = vpop.f32.mrb[6].mxu1  ;;  %v917_v59 = vmax.f32 %v885_v55, 0.0 }
 0x279   : > { %v918_v57 = vmax.f32 %v887_v54, 0.0  ;;  %v889_v58 = vpop.f32.mrb[7].mxu1 }
 0x27a   : > { %v919_v60 = vmax.f32 %v889_v58, 0.0 }
 0x27b   : > { %v930_v61 = vpack.c.bf16 %v918_v57, %v916_v56 }
 0x27c   : > { %v931_v62 = vpack.c.bf16 %v919_v60, %v917_v59 }
 0x27e   : > { %v893_v63 = vpop.f32.mrb[8].mxu1  ;;  %942 = vmatprep.subr.bf16.mxu0 %v931_v62 }
 0x27f   : > { %v895_v0 = vpop.f32.mrb[9].mxu1  ;;  %943 = vmatpush1.bf16.msra.mxu0 %v930_v61  ;;  %v920_v2 = vmax.f32 %v893_v63, 0.0 }
 0x280   : > { %v897_v1 = vpop.f32.mrb[10].mxu1  ;;  %v921_v5 = vmax.f32 %v895_v0, 0.0 }
 0x281   : > { %v922_v3 = vmax.f32 %v897_v1, 0.0  ;;  %v899_v4 = vpop.f32.mrb[11].mxu1 }
 0x282   : > { %v923_v6 = vmax.f32 %v899_v4, 0.0 }
 0x283   : > { %v932_v7 = vpack.c.bf16 %v922_v3, %v920_v2 }
 0x284   : > { %v933_v8 = vpack.c.bf16 %v923_v6, %v921_v5 }
 0x286   : > { %v903_v9 = vpop.f32.mrb[12].mxu1  ;;  %944 = vmatprep.subr.bf16.mxu0 %v933_v8 }
 0x287   : > { %v905_v10 = vpop.f32.mrb[13].mxu1  ;;  %945 = vmatpush1.bf16.msra.mxu0 %v932_v7  ;;  %v924_v12 = vmax.f32 %v903_v9, 0.0 }
 0x288   : > { %v907_v11 = vpop.f32.mrb[14].mxu1  ;;  %v925_v15 = vmax.f32 %v905_v10, 0.0 }
 0x289   : > { %v926_v13 = vmax.f32 %v907_v11, 0.0  ;;  %v909_v14 = vpop.f32.mrb[15].mxu1 }
 0x28a   : > { %v927_v16 = vmax.f32 %v909_v14, 0.0 }
 0x28b   : > { %v934_v17 = vpack.c.bf16 %v926_v13, %v924_v12 }
 0x28c   : > { %v935_v18 = vpack.c.bf16 %v927_v16, %v925_v15 }
 0x28e   : > { %946 = vmatprep.subr.bf16.mxu0 %v935_v18 }
 0x28f   : > { %947 = vmatpush1.bf16.msra.mxu0 %v934_v17 }
 0x292   : > { %1692 = vmatmul.mubr.msk.bf16.vlgmr.msra.gmra.mrb[16].mxu0 %vm826_vm1, %v936_v19 }
 0x365   : > { %v974_v25 = vpop.f32.mrb[16].mxu0 }
 0x366   : > { %v976_v27 = vpop.f32.mrb[17].mxu0 }
 0x367   : > { %v983_v28 = vcombine.low %v974_v25, %v976_v27  ;;  %v978_v29 = vpop.f32.mrb[18].mxu0  ;;  %1010 = sbr.rel (!%p2370_p5) target bundleno = 1043 (0x413), region = 106 }
 0x368   : > { %v979_v30 = vpop.f32.mrb[19].mxu0 }
 0x369   : > { %v990_v31 = vrot.slane %v983_v28, %v989_v26 }
 0x36b   : > { %v997_v32 = vrot.slane %v990_v31, %v989_v26 }
 0x36d   : > { %1003 = vst.msk [vmem:[%s2696_s24] sm:$0x3] %vm1001_vm2, %v997_v32 }
 0x36e   : > { %s3164_s10 = smov (!%p1013_p1, %s1012_s10), 2 }
 0x36f   : > { %s1695_s14 = sshll.u32 %s3164_s10, 4 }
 0x370   : > { %p1697_p2 = scmp.eq.s32.totalorder %s1695_s14, 0 }
 0x371   : > { %p1021_p3 = scmp.lt.u32.totalorder (!%p1697_p2), %s3164_s10, 8 }
 0x372   : > { %1020 = sbr.rel (%p1697_p2) target bundleno = 1043 (0x413), region = 110 }
 0x379   : > { %1024 = sbr.rel (%p1021_p3) target bundleno = 1034 (0x40a), region = 114  ;;  %s2713_s23 = sand.u32 (!%p1021_p3), 7, %s3164_s10  }
 0x37a   : > { %p1040_p5 = scmp.eq.s32.totalorder (!%p1021_p3), %s2713_s23, 0  ;;  %p1698_p4 = scmp.ne.s32.totalorder (!%p1021_p3), %s2713_s23, 0 }
 0x380   : > { %1043 = sbr.rel (%p1698_p4) target bundleno = 963 (0x3c3), region = 129  ;;  %s1044_s17 = sshrl.u32 (!%p1698_p4), %s3164_s10, 3 }
 0x381   : > { %s2720_s18 = sshrl.u32 (!%p1698_p4), %s1044_s17, 6 }
 0x382   : > { %p1699_p6 = scmp.le.s32.totalorder (!%p1698_p4), %s2720_s18, 0 }
 0x387   : > { %1567 = sbr.rel (%p1699_p6) target bundleno = 943 (0x3af), region = 277  ;;  %s3140_s25 = smov (!%p1699_p6), %s2706_s7 }
 0x388   : > { %s3141_s27 = smov (!%p1699_p6), %s2696_s24  ;;  %s2729_s28 = smov (!%p1699_p6), 0  }
 0x389   : > { %s2731_s29 = smov (!%p1699_p6), 0  }
 0x38e LB: >> { %v1057_v33 = vld [vmem:[%s2251_s27] sm:$0xff]  ;;  %v1059_v34 = vld [vmem:[%s2251_s27 + $0x8] sm:$0xff]  ;;  %v1061_v35 = vld [vmem:[%s2251_s27 + $0x10] sm:$0xff]  ;;  %s1185_s20 = sadd.s32 1, %s2255_s28  ;;  %s1051_s29 = sadd.s32 1, %s2259_s29   ;;  %s2259_s29 = sphi %s2731_s29, %s1051_s29   ;;  %s2255_s28 = sphi %s2729_s28, %s3144_s28   ;;  %s2251_s27 = sphi %s3141_s27, %s3143_s27   ;;  %s2247_s25 = sphi %s3140_s25, %s3142_s25  }
 0x38f   : >> { %1058 = vst [vmem:[%s2247_s25] sm:$0xff] %v1057_v33  ;;  %1060 = vst [vmem:[%s2247_s25 + $0x8] sm:$0xff] %v1059_v34  ;;  %v1063_v36 = vld [vmem:[%s2251_s27 + $0x18] sm:$0xff]  ;;  %v1065_v37 = vld [vmem:[%s2251_s27 + $0x20] sm:$0xff]  ;;  %p1186_p7 = scmp.ge.s32.totalorder %s1185_s20, %s2720_s18  ;;  %p1050_p8 = scmp.ge.s32.totalorder %s1051_s29, %s2720_s18 }
 0x390   : >> { %1062 = vst [vmem:[%s2247_s25 + $0x10] sm:$0xff] %v1061_v35  ;;  %v1067_v38 = vld [vmem:[%s2251_s27 + $0x28] sm:$0xff]  ;;  %1064 = vst [vmem:[%s2247_s25 + $0x18] sm:$0xff] %v1063_v36  ;;  %v1069_v39 = vld [vmem:[%s2251_s27 + $0x30] sm:$0xff] }
 0x391   : >> { %1066 = vst [vmem:[%s2247_s25 + $0x20] sm:$0xff] %v1065_v37  ;;  %1068 = vst [vmem:[%s2247_s25 + $0x28] sm:$0xff] %v1067_v38  ;;  %v1071_v40 = vld [vmem:[%s2251_s27 + $0x38] sm:$0xff]  ;;  %v1073_v41 = vld [vmem:[%s2251_s27 + $0x40] sm:$0xff]  ;;  %s3166_s20 = smov (%p1186_p7, %s1185_s20), 0 }
 0x392   : >> { %1070 = vst [vmem:[%s2247_s25 + $0x30] sm:$0xff] %v1069_v39  ;;  %1072 = vst [vmem:[%s2247_s25 + $0x38] sm:$0xff] %v1071_v40  ;;  %v1075_v42 = vld [vmem:[%s2251_s27 + $0x48] sm:$0xff]  ;;  %v1077_v43 = vld [vmem:[%s2251_s27 + $0x50] sm:$0xff]  ;;  %s1700_s26 = sshll.u32 %s3166_s20, 9  ;;  %s3144_s28 = smov %s3166_s20 }
 0x393   : >> { %1074 = vst [vmem:[%s2247_s25 + $0x40] sm:$0xff] %v1073_v41  ;;  %v1079_v44 = vld [vmem:[%s2251_s27 + $0x58] sm:$0xff]  ;;  %1076 = vst [vmem:[%s2247_s25 + $0x48] sm:$0xff] %v1075_v42  ;;  %v1081_v45 = vld [vmem:[%s2251_s27 + $0x60] sm:$0xff]  ;;  %s2787_s30 = scalar_lea.vmem %s2696_s24, %s1700_s26 [#allocation3]   ;;  %s2790_s6 = scalar_lea.vmem %s2706_s7, %s1700_s26  }
 0x394   : >> { %1078 = vst [vmem:[%s2247_s25 + $0x50] sm:$0xff] %v1077_v43  ;;  %1080 = vst [vmem:[%s2247_s25 + $0x58] sm:$0xff] %v1079_v44  ;;  %v1083_v46 = vld [vmem:[%s2251_s27 + $0x68] sm:$0xff]  ;;  %v1085_v47 = vld [vmem:[%s2251_s27 + $0x70] sm:$0xff] }
 0x395   : >> { %1082 = vst [vmem:[%s2247_s25 + $0x60] sm:$0xff] %v1081_v45  ;;  %1084 = vst [vmem:[%s2247_s25 + $0x68] sm:$0xff] %v1083_v46  ;;  %v1087_v48 = vld [vmem:[%s2251_s27 + $0x78] sm:$0xff]  ;;  %v1089_v49 = vld [vmem:[%s2251_s27 + $0x80] sm:$0xff] }
 0x396   : >> { %1086 = vst [vmem:[%s2247_s25 + $0x70] sm:$0xff] %v1085_v47  ;;  %v1091_v50 = vld [vmem:[%s2251_s27 + $0x88] sm:$0xff]  ;;  %1088 = vst [vmem:[%s2247_s25 + $0x78] sm:$0xff] %v1087_v48  ;;  %v1093_v51 = vld [vmem:[%s2251_s27 + $0x90] sm:$0xff] }
 0x397   : >> { %1090 = vst [vmem:[%s2247_s25 + $0x80] sm:$0xff] %v1089_v49  ;;  %1092 = vst [vmem:[%s2247_s25 + $0x88] sm:$0xff] %v1091_v50  ;;  %v1095_v52 = vld [vmem:[%s2251_s27 + $0x98] sm:$0xff]  ;;  %v1097_v53 = vld [vmem:[%s2251_s27 + $0xa0] sm:$0xff] }
 0x398   : >> { %1094 = vst [vmem:[%s2247_s25 + $0x90] sm:$0xff] %v1093_v51  ;;  %1096 = vst [vmem:[%s2247_s25 + $0x98] sm:$0xff] %v1095_v52  ;;  %v1099_v55 = vld [vmem:[%s2251_s27 + $0xa8] sm:$0xff]  ;;  %v1101_v54 = vld [vmem:[%s2251_s27 + $0xb0] sm:$0xff] }
 0x399   : >> { %1098 = vst [vmem:[%s2247_s25 + $0xa0] sm:$0xff] %v1097_v53  ;;  %v1103_v56 = vld [vmem:[%s2251_s27 + $0xb8] sm:$0xff]  ;;  %1100 = vst [vmem:[%s2247_s25 + $0xa8] sm:$0xff] %v1099_v55  ;;  %v1105_v57 = vld [vmem:[%s2251_s27 + $0xc0] sm:$0xff] }
 0x39a   : >> { %1102 = vst [vmem:[%s2247_s25 + $0xb0] sm:$0xff] %v1101_v54  ;;  %1104 = vst [vmem:[%s2247_s25 + $0xb8] sm:$0xff] %v1103_v56  ;;  %v1107_v58 = vld [vmem:[%s2251_s27 + $0xc8] sm:$0xff]  ;;  %v1109_v59 = vld [vmem:[%s2251_s27 + $0xd0] sm:$0xff] }
 0x39b   : >> { %1106 = vst [vmem:[%s2247_s25 + $0xc0] sm:$0xff] %v1105_v57  ;;  %1108 = vst [vmem:[%s2247_s25 + $0xc8] sm:$0xff] %v1107_v58  ;;  %v1111_v60 = vld [vmem:[%s2251_s27 + $0xd8] sm:$0xff]  ;;  %v1113_v61 = vld [vmem:[%s2251_s27 + $0xe0] sm:$0xff] }
 0x39c   : >> { %1110 = vst [vmem:[%s2247_s25 + $0xd0] sm:$0xff] %v1109_v59  ;;  %v1115_v62 = vld [vmem:[%s2251_s27 + $0xe8] sm:$0xff]  ;;  %1112 = vst [vmem:[%s2247_s25 + $0xd8] sm:$0xff] %v1111_v60  ;;  %v1117_v63 = vld [vmem:[%s2251_s27 + $0xf0] sm:$0xff] }
 0x39d   : >> { %1114 = vst [vmem:[%s2247_s25 + $0xe0] sm:$0xff] %v1113_v61  ;;  %1116 = vst [vmem:[%s2247_s25 + $0xe8] sm:$0xff] %v1115_v62  ;;  %v1119_v0 = vld [vmem:[%s2251_s27 + $0xf8] sm:$0xff]  ;;  %v1121_v1 = vld [vmem:[%s2251_s27 + $0x100] sm:$0xff] }
 0x39e   : >> { %1118 = vst [vmem:[%s2247_s25 + $0xf0] sm:$0xff] %v1117_v63  ;;  %1120 = vst [vmem:[%s2247_s25 + $0xf8] sm:$0xff] %v1119_v0  ;;  %v1123_v2 = vld [vmem:[%s2251_s27 + $0x108] sm:$0xff]  ;;  %v1125_v3 = vld [vmem:[%s2251_s27 + $0x110] sm:$0xff] }
 0x39f   : >> { %1122 = vst [vmem:[%s2247_s25 + $0x100] sm:$0xff] %v1121_v1  ;;  %v1127_v4 = vld [vmem:[%s2251_s27 + $0x118] sm:$0xff]  ;;  %1124 = vst [vmem:[%s2247_s25 + $0x108] sm:$0xff] %v1123_v2  ;;  %v1129_v5 = vld [vmem:[%s2251_s27 + $0x120] sm:$0xff] }
 0x3a0   : >> { %1126 = vst [vmem:[%s2247_s25 + $0x110] sm:$0xff] %v1125_v3  ;;  %1128 = vst [vmem:[%s2247_s25 + $0x118] sm:$0xff] %v1127_v4  ;;  %v1131_v6 = vld [vmem:[%s2251_s27 + $0x128] sm:$0xff]  ;;  %v1133_v7 = vld [vmem:[%s2251_s27 + $0x130] sm:$0xff] }
 0x3a1   : >> { %1130 = vst [vmem:[%s2247_s25 + $0x120] sm:$0xff] %v1129_v5  ;;  %1132 = vst [vmem:[%s2247_s25 + $0x128] sm:$0xff] %v1131_v6  ;;  %v1135_v8 = vld [vmem:[%s2251_s27 + $0x138] sm:$0xff]  ;;  %v1137_v9 = vld [vmem:[%s2251_s27 + $0x140] sm:$0xff] }
 0x3a2   : >> { %1134 = vst [vmem:[%s2247_s25 + $0x130] sm:$0xff] %v1133_v7  ;;  %v1139_v10 = vld [vmem:[%s2251_s27 + $0x148] sm:$0xff]  ;;  %1136 = vst [vmem:[%s2247_s25 + $0x138] sm:$0xff] %v1135_v8  ;;  %v1141_v11 = vld [vmem:[%s2251_s27 + $0x150] sm:$0xff] }
 0x3a3   : >> { %1138 = vst [vmem:[%s2247_s25 + $0x140] sm:$0xff] %v1137_v9  ;;  %1140 = vst [vmem:[%s2247_s25 + $0x148] sm:$0xff] %v1139_v10  ;;  %v1143_v12 = vld [vmem:[%s2251_s27 + $0x158] sm:$0xff]  ;;  %v1145_v13 = vld [vmem:[%s2251_s27 + $0x160] sm:$0xff] }
 0x3a4   : >> { %1142 = vst [vmem:[%s2247_s25 + $0x150] sm:$0xff] %v1141_v11  ;;  %1144 = vst [vmem:[%s2247_s25 + $0x158] sm:$0xff] %v1143_v12  ;;  %v1147_v14 = vld [vmem:[%s2251_s27 + $0x168] sm:$0xff]  ;;  %v1149_v15 = vld [vmem:[%s2251_s27 + $0x170] sm:$0xff] }
 0x3a5   : >> { %1146 = vst [vmem:[%s2247_s25 + $0x160] sm:$0xff] %v1145_v13  ;;  %v1151_v16 = vld [vmem:[%s2251_s27 + $0x178] sm:$0xff]  ;;  %1148 = vst [vmem:[%s2247_s25 + $0x168] sm:$0xff] %v1147_v14  ;;  %v1153_v17 = vld [vmem:[%s2251_s27 + $0x180] sm:$0xff] }
 0x3a6   : >> { %1150 = vst [vmem:[%s2247_s25 + $0x170] sm:$0xff] %v1149_v15  ;;  %1152 = vst [vmem:[%s2247_s25 + $0x178] sm:$0xff] %v1151_v16  ;;  %v1155_v18 = vld [vmem:[%s2251_s27 + $0x188] sm:$0xff]  ;;  %v1157_v19 = vld [vmem:[%s2251_s27 + $0x190] sm:$0xff] }
 0x3a7   : >> { %1154 = vst [vmem:[%s2247_s25 + $0x180] sm:$0xff] %v1153_v17  ;;  %1156 = vst [vmem:[%s2247_s25 + $0x188] sm:$0xff] %v1155_v18  ;;  %v1159_v20 = vld [vmem:[%s2251_s27 + $0x198] sm:$0xff]  ;;  %v1161_v21 = vld [vmem:[%s2251_s27 + $0x1a0] sm:$0xff] }
 0x3a8   : >> { %1158 = vst [vmem:[%s2247_s25 + $0x190] sm:$0xff] %v1157_v19  ;;  %v1163_v22 = vld [vmem:[%s2251_s27 + $0x1a8] sm:$0xff]  ;;  %1160 = vst [vmem:[%s2247_s25 + $0x198] sm:$0xff] %v1159_v20  ;;  %v1165_v23 = vld [vmem:[%s2251_s27 + $0x1b0] sm:$0xff]  ;;  %1053 = sbr.rel (!%p1050_p8) target bundleno = 910 (0x38e), region = 283 }
 0x3a9   : >> { %1162 = vst [vmem:[%s2247_s25 + $0x1a0] sm:$0xff] %v1161_v21  ;;  %1164 = vst [vmem:[%s2247_s25 + $0x1a8] sm:$0xff] %v1163_v22  ;;  %v1167_v24 = vld [vmem:[%s2251_s27 + $0x1b8] sm:$0xff]  ;;  %v1169_v25 = vld [vmem:[%s2251_s27 + $0x1c0] sm:$0xff] }
 0x3aa   : >> { %1166 = vst [vmem:[%s2247_s25 + $0x1b0] sm:$0xff] %v1165_v23  ;;  %1168 = vst [vmem:[%s2247_s25 + $0x1b8] sm:$0xff] %v1167_v24  ;;  %v1171_v26 = vld [vmem:[%s2251_s27 + $0x1c8] sm:$0xff]  ;;  %v1173_v27 = vld [vmem:[%s2251_s27 + $0x1d0] sm:$0xff] }
 0x3ab   : >> { %1170 = vst [vmem:[%s2247_s25 + $0x1c0] sm:$0xff] %v1169_v25  ;;  %v1175_v28 = vld [vmem:[%s2251_s27 + $0x1d8] sm:$0xff]  ;;  %1172 = vst [vmem:[%s2247_s25 + $0x1c8] sm:$0xff] %v1171_v26  ;;  %v1177_v29 = vld [vmem:[%s2251_s27 + $0x1e0] sm:$0xff] }
 0x3ac   : >> { %1174 = vst [vmem:[%s2247_s25 + $0x1d0] sm:$0xff] %v1173_v27  ;;  %1176 = vst [vmem:[%s2247_s25 + $0x1d8] sm:$0xff] %v1175_v28  ;;  %v1179_v30 = vld [vmem:[%s2251_s27 + $0x1e8] sm:$0xff]  ;;  %v1181_v31 = vld [vmem:[%s2251_s27 + $0x1f0] sm:$0xff] }
 0x3ad   : >> { %1178 = vst [vmem:[%s2247_s25 + $0x1e0] sm:$0xff] %v1177_v29  ;;  %1180 = vst [vmem:[%s2247_s25 + $0x1e8] sm:$0xff] %v1179_v30  ;;  %v1183_v32 = vld [vmem:[%s2251_s27 + $0x1f8] sm:$0xff]  ;;  %s3143_s27 = smov %s2787_s30 }
 0x3ae   : >> { %1182 = vst [vmem:[%s2247_s25 + $0x1f0] sm:$0xff] %v1181_v31  ;;  %1184 = vst [vmem:[%s2247_s25 + $0x1f8] sm:$0xff] %v1183_v32  ;;  %s3142_s25 = smov %s2790_s6 }
 0x3af PF: > { %s2896_s12 = sand.u32 63, %s1044_s17   ;;  %s1725_s9 = sshll.u32 %s2720_s18, 13 }
 0x3b0   : > { %s1196_s21 = sshra.s32 %s1725_s9, 4  ;;  %p1705_p9 = scmp.le.s32.totalorder %s2896_s12, 0 }
 0x3b1   : > { %s1197_s5 = scalar_lea.vmem %s2696_s24, %s1196_s21 [#allocation3]   ;;  %s1200_s8 = scalar_lea.vmem %s2706_s7, %s1196_s21  }
 0x3b2   : > { %1581 = sbr.rel (%p1705_p9) target bundleno = 963 (0x3c3), region = 288  ;;  %s2261_s13 = smov (!%p1705_p9), %s1200_s8  }
 0x3b3   : > { %s2265_s11 = smov (!%p1705_p9), %s1197_s5   ;;  %s2269_s15 = smov (!%p1705_p9), 0  }
 0x3b4   : > { %s2273_s14 = smov (!%p1705_p9), 0  }
 0x3b9 LB: >> { %v1212_v33 = vld [vmem:[%s2267_s11] sm:$0xff]  ;;  %s1214_s17 = sadd.s32 1, %s2271_s15  ;;  %s1206_s14 = sadd.s32 1, %s2275_s14   ;;  %s2275_s14 = sphi %s2273_s14, %s1206_s14   ;;  %s2271_s15 = sphi %s2269_s15, %s2270_s15   ;;  %s2267_s11 = sphi %s2265_s11, %s1219_s11   ;;  %s2263_s13 = sphi %s2261_s13, %s1220_s13  }
 0x3ba   : >> { %1213 = vst [vmem:[%s2263_s13] sm:$0xff] %v1212_v33  ;;  %p1215_p10 = scmp.ge.s32.totalorder %s1214_s17, %s2896_s12  ;;  %p1205_p11 = scmp.ge.s32.totalorder %s1206_s14, %s2896_s12 }
 0x3bc   : >> { %s3168_s17 = smov (%p1215_p10, %s1214_s17), 0  ;;  %1208 = sbr.rel (!%p1205_p11) target bundleno = 953 (0x3b9), region = 294 }
 0x3bd   : >> { %s1706_s18 = sshll.u32 %s3168_s17, 3  ;;  %s2270_s15 = smov %s3168_s17  }
 0x3be   : >> { %s1219_s11 = scalar_lea.vmem %s1197_s5, %s1706_s18 [#allocation3]   ;;  %s1220_s13 = scalar_lea.vmem %s1200_s8, %s1706_s18  }
 0x3c3 PF: > { %1223 = sbr.rel (%p1040_p5) target bundleno = 1034 (0x40a), region = 147  ;;  %s2908_s25 = ssub.s32 (!%p1040_p5), %s3164_s10, %s2713_s23 }
 0x3c4   : > { %s1229_s27 = sshrl.u32 (!%p1040_p5), %s3164_s10, 3  ;;  %s1226_s28 = scalar_lea.vmem (!%p1040_p5), %s2696_s24, %s2908_s25 [#allocation3] }
 0x3c5   : > { %s1228_s29 = scalar_lea.vmem (!%p1040_p5), %s2706_s7, %s2908_s25  ;;  %s2917_s20 = sshrl.u32 (!%p1040_p5), %s1229_s27, 6 }
 0x3c6   : > { %p1708_p12 = scmp.le.s32.totalorder (!%p1040_p5), %s2917_s20, 0 }
 0x3ca   : > { %1595 = sbr.rel (%p1708_p12) target bundleno = 1010 (0x3f2), region = 299  ;;  %s3145_s26 = smov (!%p1708_p12), %s2706_s7 }
 0x3cb   : > { %s3146_s30 = smov (!%p1708_p12), %s2696_s24  ;;  %s2926_s6 = smov (!%p1708_p12), 0  }
 0x3cc   : > { %s2928_s12 = smov (!%p1708_p12), 0  }
 0x3d1 LB: >> { %v1242_v34 = vld [vmem:[%s2283_s30] sm:$0xff]  ;;  %v1244_v35 = vld [vmem:[%s2283_s30 + $0x8] sm:$0xff]  ;;  %v1246_v36 = vld [vmem:[%s2283_s30 + $0x10] sm:$0xff]  ;;  %s1370_s9 = sadd.s32 1, %s2287_s6  ;;  %s1236_s12 = sadd.s32 1, %s2291_s12   ;;  %s2291_s12 = sphi %s2928_s12, %s1236_s12   ;;  %s2287_s6 = sphi %s2926_s6, %s3149_s6   ;;  %s2283_s30 = sphi %s3146_s30, %s3148_s30   ;;  %s2279_s26 = sphi %s3145_s26, %s3147_s26  }
 0x3d2   : >> { %1243 = vst [vmem:[%s2279_s26] sm:$0xff] %v1242_v34  ;;  %1245 = vst [vmem:[%s2279_s26 + $0x8] sm:$0xff] %v1244_v35  ;;  %v1248_v37 = vld [vmem:[%s2283_s30 + $0x18] sm:$0xff]  ;;  %v1250_v38 = vld [vmem:[%s2283_s30 + $0x20] sm:$0xff]  ;;  %p1371_p13 = scmp.ge.s32.totalorder %s1370_s9, %s2917_s20  ;;  %p1235_p0 = scmp.ge.s32.totalorder %s1236_s12, %s2917_s20 }
 0x3d3   : >> { %1247 = vst [vmem:[%s2279_s26 + $0x10] sm:$0xff] %v1246_v36  ;;  %v1252_v39 = vld [vmem:[%s2283_s30 + $0x28] sm:$0xff]  ;;  %1249 = vst [vmem:[%s2279_s26 + $0x18] sm:$0xff] %v1248_v37  ;;  %v1254_v40 = vld [vmem:[%s2283_s30 + $0x30] sm:$0xff] }
 0x3d4   : >> { %1251 = vst [vmem:[%s2279_s26 + $0x20] sm:$0xff] %v1250_v38  ;;  %1253 = vst [vmem:[%s2279_s26 + $0x28] sm:$0xff] %v1252_v39  ;;  %v1256_v41 = vld [vmem:[%s2283_s30 + $0x38] sm:$0xff]  ;;  %v1258_v42 = vld [vmem:[%s2283_s30 + $0x40] sm:$0xff]  ;;  %s3170_s9 = smov (%p1371_p13, %s1370_s9), 0 }
 0x3d5   : >> { %1255 = vst [vmem:[%s2279_s26 + $0x30] sm:$0xff] %v1254_v40  ;;  %1257 = vst [vmem:[%s2279_s26 + $0x38] sm:$0xff] %v1256_v41  ;;  %v1260_v43 = vld [vmem:[%s2283_s30 + $0x48] sm:$0xff]  ;;  %v1262_v44 = vld [vmem:[%s2283_s30 + $0x50] sm:$0xff]  ;;  %s1709_s21 = sshll.u32 %s3170_s9, 9  ;;  %s3149_s6 = smov %s3170_s9 }
 0x3d6   : >> { %1259 = vst [vmem:[%s2279_s26 + $0x40] sm:$0xff] %v1258_v42  ;;  %v1264_v45 = vld [vmem:[%s2283_s30 + $0x58] sm:$0xff]  ;;  %1261 = vst [vmem:[%s2279_s26 + $0x48] sm:$0xff] %v1260_v43  ;;  %v1266_v46 = vld [vmem:[%s2283_s30 + $0x60] sm:$0xff]  ;;  %s2984_s5 = scalar_lea.vmem %s2696_s24, %s1709_s21 [#allocation3]   ;;  %s2987_s8 = scalar_lea.vmem %s2706_s7, %s1709_s21  }
 0x3d7   : >> { %1263 = vst [vmem:[%s2279_s26 + $0x50] sm:$0xff] %v1262_v44  ;;  %1265 = vst [vmem:[%s2279_s26 + $0x58] sm:$0xff] %v1264_v45  ;;  %v1268_v47 = vld [vmem:[%s2283_s30 + $0x68] sm:$0xff]  ;;  %v1270_v48 = vld [vmem:[%s2283_s30 + $0x70] sm:$0xff] }
 0x3d8   : >> { %1267 = vst [vmem:[%s2279_s26 + $0x60] sm:$0xff] %v1266_v46  ;;  %1269 = vst [vmem:[%s2279_s26 + $0x68] sm:$0xff] %v1268_v47  ;;  %v1272_v49 = vld [vmem:[%s2283_s30 + $0x78] sm:$0xff]  ;;  %v1274_v50 = vld [vmem:[%s2283_s30 + $0x80] sm:$0xff] }
 0x3d9   : >> { %1271 = vst [vmem:[%s2279_s26 + $0x70] sm:$0xff] %v1270_v48  ;;  %v1276_v51 = vld [vmem:[%s2283_s30 + $0x88] sm:$0xff]  ;;  %1273 = vst [vmem:[%s2279_s26 + $0x78] sm:$0xff] %v1272_v49  ;;  %v1278_v52 = vld [vmem:[%s2283_s30 + $0x90] sm:$0xff] }
 0x3da   : >> { %1275 = vst [vmem:[%s2279_s26 + $0x80] sm:$0xff] %v1274_v50  ;;  %1277 = vst [vmem:[%s2279_s26 + $0x88] sm:$0xff] %v1276_v51  ;;  %v1280_v53 = vld [vmem:[%s2283_s30 + $0x98] sm:$0xff]  ;;  %v1282_v55 = vld [vmem:[%s2283_s30 + $0xa0] sm:$0xff] }
 0x3db   : >> { %1279 = vst [vmem:[%s2279_s26 + $0x90] sm:$0xff] %v1278_v52  ;;  %1281 = vst [vmem:[%s2279_s26 + $0x98] sm:$0xff] %v1280_v53  ;;  %v1284_v54 = vld [vmem:[%s2283_s30 + $0xa8] sm:$0xff]  ;;  %v1286_v56 = vld [vmem:[%s2283_s30 + $0xb0] sm:$0xff] }
 0x3dc   : >> { %1283 = vst [vmem:[%s2279_s26 + $0xa0] sm:$0xff] %v1282_v55  ;;  %v1288_v57 = vld [vmem:[%s2283_s30 + $0xb8] sm:$0xff]  ;;  %1285 = vst [vmem:[%s2279_s26 + $0xa8] sm:$0xff] %v1284_v54  ;;  %v1290_v58 = vld [vmem:[%s2283_s30 + $0xc0] sm:$0xff] }
 0x3dd   : >> { %1287 = vst [vmem:[%s2279_s26 + $0xb0] sm:$0xff] %v1286_v56  ;;  %1289 = vst [vmem:[%s2279_s26 + $0xb8] sm:$0xff] %v1288_v57  ;;  %v1292_v59 = vld [vmem:[%s2283_s30 + $0xc8] sm:$0xff]  ;;  %v1294_v60 = vld [vmem:[%s2283_s30 + $0xd0] sm:$0xff] }
 0x3de   : >> { %1291 = vst [vmem:[%s2279_s26 + $0xc0] sm:$0xff] %v1290_v58  ;;  %1293 = vst [vmem:[%s2279_s26 + $0xc8] sm:$0xff] %v1292_v59  ;;  %v1296_v61 = vld [vmem:[%s2283_s30 + $0xd8] sm:$0xff]  ;;  %v1298_v62 = vld [vmem:[%s2283_s30 + $0xe0] sm:$0xff] }
 0x3df   : >> { %1295 = vst [vmem:[%s2279_s26 + $0xd0] sm:$0xff] %v1294_v60  ;;  %v1300_v63 = vld [vmem:[%s2283_s30 + $0xe8] sm:$0xff]  ;;  %1297 = vst [vmem:[%s2279_s26 + $0xd8] sm:$0xff] %v1296_v61  ;;  %v1302_v0 = vld [vmem:[%s2283_s30 + $0xf0] sm:$0xff] }
 0x3e0   : >> { %1299 = vst [vmem:[%s2279_s26 + $0xe0] sm:$0xff] %v1298_v62  ;;  %1301 = vst [vmem:[%s2279_s26 + $0xe8] sm:$0xff] %v1300_v63  ;;  %v1304_v1 = vld [vmem:[%s2283_s30 + $0xf8] sm:$0xff]  ;;  %v1306_v2 = vld [vmem:[%s2283_s30 + $0x100] sm:$0xff] }
 0x3e1   : >> { %1303 = vst [vmem:[%s2279_s26 + $0xf0] sm:$0xff] %v1302_v0  ;;  %1305 = vst [vmem:[%s2279_s26 + $0xf8] sm:$0xff] %v1304_v1  ;;  %v1308_v3 = vld [vmem:[%s2283_s30 + $0x108] sm:$0xff]  ;;  %v1310_v4 = vld [vmem:[%s2283_s30 + $0x110] sm:$0xff] }
 0x3e2   : >> { %1307 = vst [vmem:[%s2279_s26 + $0x100] sm:$0xff] %v1306_v2  ;;  %v1312_v5 = vld [vmem:[%s2283_s30 + $0x118] sm:$0xff]  ;;  %1309 = vst [vmem:[%s2279_s26 + $0x108] sm:$0xff] %v1308_v3  ;;  %v1314_v6 = vld [vmem:[%s2283_s30 + $0x120] sm:$0xff] }
 0x3e3   : >> { %1311 = vst [vmem:[%s2279_s26 + $0x110] sm:$0xff] %v1310_v4  ;;  %1313 = vst [vmem:[%s2279_s26 + $0x118] sm:$0xff] %v1312_v5  ;;  %v1316_v7 = vld [vmem:[%s2283_s30 + $0x128] sm:$0xff]  ;;  %v1318_v8 = vld [vmem:[%s2283_s30 + $0x130] sm:$0xff] }
 0x3e4   : >> { %1315 = vst [vmem:[%s2279_s26 + $0x120] sm:$0xff] %v1314_v6  ;;  %1317 = vst [vmem:[%s2279_s26 + $0x128] sm:$0xff] %v1316_v7  ;;  %v1320_v9 = vld [vmem:[%s2283_s30 + $0x138] sm:$0xff]  ;;  %v1322_v10 = vld [vmem:[%s2283_s30 + $0x140] sm:$0xff] }
 0x3e5   : >> { %1319 = vst [vmem:[%s2279_s26 + $0x130] sm:$0xff] %v1318_v8  ;;  %v1324_v11 = vld [vmem:[%s2283_s30 + $0x148] sm:$0xff]  ;;  %1321 = vst [vmem:[%s2279_s26 + $0x138] sm:$0xff] %v1320_v9  ;;  %v1326_v12 = vld [vmem:[%s2283_s30 + $0x150] sm:$0xff] }
 0x3e6   : >> { %1323 = vst [vmem:[%s2279_s26 + $0x140] sm:$0xff] %v1322_v10  ;;  %1325 = vst [vmem:[%s2279_s26 + $0x148] sm:$0xff] %v1324_v11  ;;  %v1328_v13 = vld [vmem:[%s2283_s30 + $0x158] sm:$0xff]  ;;  %v1330_v14 = vld [vmem:[%s2283_s30 + $0x160] sm:$0xff] }
 0x3e7   : >> { %1327 = vst [vmem:[%s2279_s26 + $0x150] sm:$0xff] %v1326_v12  ;;  %1329 = vst [vmem:[%s2279_s26 + $0x158] sm:$0xff] %v1328_v13  ;;  %v1332_v15 = vld [vmem:[%s2283_s30 + $0x168] sm:$0xff]  ;;  %v1334_v16 = vld [vmem:[%s2283_s30 + $0x170] sm:$0xff] }
 0x3e8   : >> { %1331 = vst [vmem:[%s2279_s26 + $0x160] sm:$0xff] %v1330_v14  ;;  %v1336_v17 = vld [vmem:[%s2283_s30 + $0x178] sm:$0xff]  ;;  %1333 = vst [vmem:[%s2279_s26 + $0x168] sm:$0xff] %v1332_v15  ;;  %v1338_v18 = vld [vmem:[%s2283_s30 + $0x180] sm:$0xff] }
 0x3e9   : >> { %1335 = vst [vmem:[%s2279_s26 + $0x170] sm:$0xff] %v1334_v16  ;;  %1337 = vst [vmem:[%s2279_s26 + $0x178] sm:$0xff] %v1336_v17  ;;  %v1340_v19 = vld [vmem:[%s2283_s30 + $0x188] sm:$0xff]  ;;  %v1342_v20 = vld [vmem:[%s2283_s30 + $0x190] sm:$0xff] }
 0x3ea   : >> { %1339 = vst [vmem:[%s2279_s26 + $0x180] sm:$0xff] %v1338_v18  ;;  %1341 = vst [vmem:[%s2279_s26 + $0x188] sm:$0xff] %v1340_v19  ;;  %v1344_v21 = vld [vmem:[%s2283_s30 + $0x198] sm:$0xff]  ;;  %v1346_v22 = vld [vmem:[%s2283_s30 + $0x1a0] sm:$0xff] }
 0x3eb   : >> { %1343 = vst [vmem:[%s2279_s26 + $0x190] sm:$0xff] %v1342_v20  ;;  %v1348_v23 = vld [vmem:[%s2283_s30 + $0x1a8] sm:$0xff]  ;;  %1345 = vst [vmem:[%s2279_s26 + $0x198] sm:$0xff] %v1344_v21  ;;  %v1350_v24 = vld [vmem:[%s2283_s30 + $0x1b0] sm:$0xff]  ;;  %1238 = sbr.rel (!%p1235_p0) target bundleno = 977 (0x3d1), region = 305 }
 0x3ec   : >> { %1347 = vst [vmem:[%s2279_s26 + $0x1a0] sm:$0xff] %v1346_v22  ;;  %1349 = vst [vmem:[%s2279_s26 + $0x1a8] sm:$0xff] %v1348_v23  ;;  %v1352_v25 = vld [vmem:[%s2283_s30 + $0x1b8] sm:$0xff]  ;;  %v1354_v26 = vld [vmem:[%s2283_s30 + $0x1c0] sm:$0xff] }
 0x3ed   : >> { %1351 = vst [vmem:[%s2279_s26 + $0x1b0] sm:$0xff] %v1350_v24  ;;  %1353 = vst [vmem:[%s2279_s26 + $0x1b8] sm:$0xff] %v1352_v25  ;;  %v1356_v27 = vld [vmem:[%s2283_s30 + $0x1c8] sm:$0xff]  ;;  %v1358_v28 = vld [vmem:[%s2283_s30 + $0x1d0] sm:$0xff] }
 0x3ee   : >> { %1355 = vst [vmem:[%s2279_s26 + $0x1c0] sm:$0xff] %v1354_v26  ;;  %v1360_v29 = vld [vmem:[%s2283_s30 + $0x1d8] sm:$0xff]  ;;  %1357 = vst [vmem:[%s2279_s26 + $0x1c8] sm:$0xff] %v1356_v27  ;;  %v1362_v30 = vld [vmem:[%s2283_s30 + $0x1e0] sm:$0xff] }
 0x3ef   : >> { %1359 = vst [vmem:[%s2279_s26 + $0x1d0] sm:$0xff] %v1358_v28  ;;  %1361 = vst [vmem:[%s2279_s26 + $0x1d8] sm:$0xff] %v1360_v29  ;;  %v1364_v31 = vld [vmem:[%s2283_s30 + $0x1e8] sm:$0xff]  ;;  %v1366_v32 = vld [vmem:[%s2283_s30 + $0x1f0] sm:$0xff] }
 0x3f0   : >> { %1363 = vst [vmem:[%s2279_s26 + $0x1e0] sm:$0xff] %v1362_v30  ;;  %1365 = vst [vmem:[%s2279_s26 + $0x1e8] sm:$0xff] %v1364_v31  ;;  %v1368_v33 = vld [vmem:[%s2283_s30 + $0x1f8] sm:$0xff]  ;;  %s3148_s30 = smov %s2984_s5 }
 0x3f1   : >> { %1367 = vst [vmem:[%s2279_s26 + $0x1f0] sm:$0xff] %v1366_v32  ;;  %1369 = vst [vmem:[%s2279_s26 + $0x1f8] sm:$0xff] %v1368_v33  ;;  %s3147_s26 = smov %s2987_s8 }
 0x3f2 PF: > { %s3093_s13 = sand.u32 63, %s1229_s27   ;;  %s1727_s11 = sshll.u32 %s2917_s20, 13 }
 0x3f3   : > { %s1381_s15 = sshra.s32 %s1727_s11, 4  ;;  %p1714_p1 = scmp.le.s32.totalorder %s3093_s13, 0 }
 0x3f4   : > { %s1382_s14 = scalar_lea.vmem %s2696_s24, %s1381_s15 [#allocation3]   ;;  %s1385_s17 = scalar_lea.vmem %s2706_s7, %s1381_s15  }
 0x3f5   : > { %1609 = sbr.rel (%p1714_p1) target bundleno = 1030 (0x406), region = 310  ;;  %s2293_s18 = smov (!%p1714_p1), %s1385_s17  }
 0x3f6   : > { %s2297_s9 = smov (!%p1714_p1), %s1382_s14   ;;  %s2301_s21 = smov (!%p1714_p1), 0  }
 0x3f7   : > { %s2305_s12 = smov (!%p1714_p1), 0  }
 0x3fc LB: >> { %v1397_v34 = vld [vmem:[%s2299_s9] sm:$0xff]  ;;  %s1399_s27 = sadd.s32 1, %s2303_s21  ;;  %s1391_s12 = sadd.s32 1, %s2307_s12   ;;  %s2307_s12 = sphi %s2305_s12, %s1391_s12   ;;  %s2303_s21 = sphi %s2301_s21, %s2302_s21   ;;  %s2299_s9 = sphi %s2297_s9, %s1404_s9   ;;  %s2295_s18 = sphi %s2293_s18, %s1405_s18  }
 0x3fd   : >> { %1398 = vst [vmem:[%s2295_s18] sm:$0xff] %v1397_v34  ;;  %p1400_p2 = scmp.ge.s32.totalorder %s1399_s27, %s3093_s13  ;;  %p1390_p3 = scmp.ge.s32.totalorder %s1391_s12, %s3093_s13 }
 0x3ff   : >> { %s3172_s27 = smov (%p1400_p2, %s1399_s27), 0  ;;  %1393 = sbr.rel (!%p1390_p3) target bundleno = 1020 (0x3fc), region = 316 }
 0x400   : >> { %s1715_s20 = sshll.u32 %s3172_s27, 3  ;;  %s2302_s21 = smov %s3172_s27  }
 0x401   : >> { %s1404_s9 = scalar_lea.vmem %s1382_s14, %s1715_s20 [#allocation3]   ;;  %s1405_s18 = scalar_lea.vmem %s1385_s17, %s1715_s20  }
 0x406 PF: > { %s2313_s26 = smov 0  }
 0x407   : > { %s1406_s30 = sshllo.u32 %s2313_s26, %s2713_s23 }
 0x408   : > { %v1415_v35 = vld [vmem:[%s1226_s28] sm:%s1406_s30] }
 0x409   : > { %1416 = vst [vmem:[%s1228_s29] sm:%s1406_s30] %v1415_v35 }
 0x40a PF: > { %p1717_p5 = scmp.ge.u32.totalorder %s3164_s10, 8 }
 0x40b   : > { %s2314_s6 = smov (!%p1717_p5), 0  }
 0x40c   : > { %1027 = sbr.rel (%p1717_p5) target bundleno = 1043 (0x413), region = 118  ;;  %s1028_s5 = sshllo.u32 (!%p1717_p5), %s2314_s6, %s3164_s10 }
 0x40d   : > { %v1037_v36 = vld [vmem:[%s2696_s24] sm:%s1028_s5] (!%p1717_p5) }
 0x40e   : > { %1038 = vst [vmem:[%s2706_s7] sm:%s1028_s5] (!%p1717_p5), %v1037_v36 }
 0x413 PF: > { %p11_p4 = scmp.ge.s32.totalorder %s2357_s19, 4   ;;  %s3150_s15 = smov %s2175_s16 }
 0x414   : > { %s3151_s16 = smov %s2368_s22  ;;  %s3152_s17 = smov %s2357_s19 }
 0x415   :  { %13 = sbr.rel (!%p11_p4) target bundleno = 2 (0x2), region = 327 }

</bundles_post_ra>
